<compile_context>
chip_gen: v7x
topology: tpu7x:2x2x1
jax: 0.10.0
libtpu: 0.0.40
codegen_flags: <defaults>
</compile_context>

<pallas_src>
import functools
import math

import jax
import jax.numpy as jnp
from jax.experimental import pallas as pl
from jax.experimental.pallas import tpu as pltpu

LANE = 128
_UNROLL_THRESHOLD = 8


def _round_up(n, m):
    return ((n + m - 1) // m) * m


def _pad_to(a, shape):
    pads = tuple((0, t - s) for s, t in zip(a.shape, shape))
    if all(p == (0, 0) for p in pads):
        return a
    return jnp.pad(a, pads)


# ----------------------------- kernel -------------------------------------- #

def resmlp_kernel(x_ref, w_in_ref, b_in_ref, w1_ref, b1_ref, w2_ref, b2_ref,
                  w_out_ref, b_out_ref, o_ref, *, nblocks, mm_dtype):
    # Shapes (feature dims already padded to multiples of 128):
    #   x_ref:     (bm, in_p)           o_ref:     (bm, out_p)
    #   w_in_ref:  (in_p, h_p)          b_in_ref:  (1, h_p)
    #   w1_ref:    (nblocks, h_p, r_p)  b1_ref:    (nblocks, 1, r_p)
    #   w2_ref:    (nblocks, r_p, h_p)  b2_ref:    (nblocks, 1, h_p)
    #   w_out_ref: (h_p, out_p)         b_out_ref: (1, out_p)
    def mm(a, w):
        # bf16 (or f32) MXU inputs, f32 accumulation.
        return jnp.dot(a.astype(mm_dtype), w.astype(mm_dtype),
                       preferred_element_type=jnp.float32)

    # x = relu(fc_in(x))
    h = jnp.maximum(mm(x_ref[...], w_in_ref[...]) + b_in_ref[...], 0.0)

    # Residual MLP block: x = relu(x + fc2(relu(fc1(x))))
    def block(i, h):
        y = jnp.maximum(mm(h, w1_ref[i]) + b1_ref[i], 0.0)
        y = mm(y, w2_ref[i]) + b2_ref[i]
        return jnp.maximum(h + y, 0.0)

    if nblocks <= _UNROLL_THRESHOLD:
        for i in range(nblocks):            # small static trip count: straight-line MXU
            h = block(i, h)
    else:
        # Deep nets: fori_loop bounds live ranges so block weights/intermediates
        # don't all stay live at once (avoids vreg spill).
        h = jax.lax.fori_loop(0, nblocks, block, h)

    # fc_out (no activation)
    o_ref[...] = mm(h, w_out_ref[...]) + b_out_ref[...]


# ----------------------------- wrapper -------------------------------------- #

def resmlp_forward(x, params, *, batch_tile=256, use_bf16=False):
    """x: (..., in_dim) float32 -> (..., out_dim) float32. One fused pallas_call."""
    orig_shape = x.shape
    in_dim = orig_shape[-1]
    x2 = x.reshape(-1, in_dim)                      # fold leading axes into the M dim
    B = x2.shape[0]

    hidden = params["w_in"].shape[1]
    res = params["w1"].shape[2]
    out_dim = params["w_out"].shape[1]
    nblocks = params["w1"].shape[0]

    in_p, h_p, r_p, out_p = (_round_up(d, LANE) for d in (in_dim, hidden, res, out_dim))

    # Batch tile: multiple of 8 (f32) / 16 (bf16) rows; aim for >=2 parallel grid
    # steps (v7x has 2 TensorCores); pad ragged batches instead of one giant tile.
    g = 16 if use_bf16 else 8
    bm = max(g, min(batch_tile, _round_up(pl.cdiv(B, 2), g)))
    B_pad = _round_up(B, bm)
    grid = (B_pad // bm,)

    w_dtype = jnp.bfloat16 if use_bf16 else jnp.float32
    x_p = _pad_to(x2.astype(jnp.float32), (B_pad, in_p))
    w_in = _pad_to(params["w_in"], (in_p, h_p)).astype(w_dtype)
    b_in = _pad_to(params["b_in"], (1, h_p))
    w1 = _pad_to(params["w1"], (nblocks, h_p, r_p)).astype(w_dtype)
    b1 = _pad_to(params["b1"], (nblocks, 1, r_p))
    w2 = _pad_to(params["w2"], (nblocks, r_p, h_p)).astype(w_dtype)
    b2 = _pad_to(params["b2"], (nblocks, 1, h_p))
    w_out = _pad_to(params["w_out"], (h_p, out_p)).astype(w_dtype)
    b_out = _pad_to(params["b_out"], (1, out_p))
    weights = (w_in, b_in, w1, b1, w2, b2, w_out, b_out)

    # VMEM budget (explicit limit, clamped to v7x's 64 MiB) + scheduler cost hint.
    wbytes = sum(int(a.size) * a.dtype.itemsize for a in weights)
    act_bytes = bm * (in_p + h_p + r_p + out_p) * 4 * 2
    vmem_limit = int(min(64 << 20, max(32 << 20, 2 * wbytes + act_bytes + (4 << 20))))
    # TODO(synk): if stacked block weights exceed ~24-28 MiB (v7x budget), stream w1/w2
    # over an extra "arbitrary" nblocks grid axis instead of keeping all blocks resident.
    flops = 2 * B_pad * (in_p * h_p + nblocks * 2 * h_p * r_p + h_p * out_p)
    bytes_accessed = int(x_p.size) * 4 + wbytes + B_pad * out_p * 4
    cost = pl.CostEstimate(flops=flops, transcendentals=0,
                           bytes_accessed=bytes_accessed)

    kernel = functools.partial(resmlp_kernel, nblocks=nblocks, mm_dtype=w_dtype)

    def build(single_buffer_weights):
        def const_spec(a):
            nd = a.ndim
            imap = lambda i: (0,) * nd
            if single_buffer_weights:
                # Block index never changes -> one resident copy is enough.
                return pl.BlockSpec(a.shape, imap, pipeline_mode=pl.Buffered(1))
            return pl.BlockSpec(a.shape, imap)

        return pl.pallas_call(
            kernel,
            out_shape=jax.ShapeDtypeStruct((B_pad, out_p), jnp.float32),
            grid=grid,
            in_specs=[pl.BlockSpec((bm, in_p), lambda i: (i, 0))]
                     + [const_spec(a) for a in weights],
            out_specs=pl.BlockSpec((bm, out_p), lambda i: (i, 0)),
            compiler_params=pltpu.CompilerParams(
                dimension_semantics=("parallel",),
                vmem_limit_bytes=vmem_limit),
            cost_estimate=cost,
        )

    args = (x_p,) + weights
    try:
        out = build(single_buffer_weights=True)(*args)
    except Exception:
        # Fallback for jax versions without BlockSpec(pipeline_mode=...).
        out = build(single_buffer_weights=False)(*args)

    return out[:B, :out_dim].reshape(orig_shape[:-1] + (out_dim,))


# ----------------------------- pure-JAX reference --------------------------- #

def resmlp_reference(x, params):
    h = jnp.maximum(x @ params["w_in"] + params["b_in"], 0.0)
    for i in range(params["w1"].shape[0]):
        y = jnp.maximum(h @ params["w1"][i] + params["b1"][i], 0.0)
        y = y @ params["w2"][i] + params["b2"][i]
        h = jnp.maximum(h + y, 0.0)
    return h @ params["w_out"] + params["b_out"]


# ----------------------------- parameter setup ------------------------------ #

def init_params(key, in_dim, hidden_dim, res_dim, nblocks, out_dim):
    """Weights stored right-multiply (in_features, out_features); biases (1, out)."""
    def lin(k, fan_in, fan_out):
        lim = 1.0 / math.sqrt(fan_in)            # matches nn.Linear default bound
        kw, kb = jax.random.split(k)
        w = jax.random.uniform(kw, (fan_in, fan_out), jnp.float32, -lim, lim)
        b = jax.random.uniform(kb, (1, fan_out), jnp.float32, -lim, lim)
        return w, b

    ks = jax.random.split(key, 2 + 2 * nblocks)
    w_in, b_in = lin(ks[0], in_dim, hidden_dim)
    w_out, b_out = lin(ks[1], hidden_dim, out_dim)

    w1s, b1s, w2s, b2s = [], [], [], []
    for i in range(nblocks):
        w1, b1 = lin(ks[2 + 2 * i], hidden_dim, res_dim)
        w2, b2 = lin(ks[3 + 2 * i], res_dim, hidden_dim)
        w1s.append(w1); b1s.append(b1); w2s.append(w2); b2s.append(b2)

    return {
        "w_in": w_in, "b_in": b_in,
        "w1": jnp.stack(w1s), "b1": jnp.stack(b1s),   # (nblocks, hidden, res), (nblocks, 1, res)
        "w2": jnp.stack(w2s), "b2": jnp.stack(b2s),   # (nblocks, res, hidden), (nblocks, 1, hidden)
        "w_out": w_out, "b_out": b_out,
    }


# ----------------------------- driver ---------------------------------------- #

if __name__ == "__main__":
    # Small shapes consistent with the module; B=13 deliberately ragged to exercise
    # the batch-padding path, f32 grid has 2 parallel steps (bm=8).
    B, in_dim, hidden_dim, res_dim, nblocks, out_dim = 13, 4, 32, 64, 2, 16

    key = jax.random.PRNGKey(0)
    kx, kp = jax.random.split(key)
    x = jax.random.normal(kx, (B, in_dim), jnp.float32)
    params = init_params(kp, in_dim, hidden_dim, res_dim, nblocks, out_dim)

    y_ref = resmlp_reference(x, params)

    # Exact-parity f32 path.
    y = jax.block_until_ready(resmlp_forward(x, params))
    assert y.shape == (B, out_dim), y.shape
    assert bool(jnp.all(jnp.isfinite(y)))
    assert bool(jnp.allclose(y, y_ref, rtol=1e-5, atol=1e-5)), \
        float(jnp.max(jnp.abs(y - y_ref)))

    # Opt-in bf16 MXU fast path (f32 accumulation) for v6e/v7x throughput.
    y_fast = jax.block_until_ready(resmlp_forward(x, params, use_bf16=True))
    assert y_fast.shape == (B, out_dim), y_fast.shape
    assert bool(jnp.all(jnp.isfinite(y_fast)))
    assert bool(jnp.allclose(y_fast, y_ref, rtol=5e-2, atol=5e-2)), \
        float(jnp.max(jnp.abs(y_fast - y_ref)))

    print("KERNEL_OK")
</pallas_src>

<mosaic_0001>
module attributes {stable_mosaic.version = 11 : i64} {
  func.func @resmlp_kernel(%arg0: i32, %arg1: memref<8x128xf32, #tpu.memory_space<vmem>>, %arg2: memref<128x128xf32, #tpu.memory_space<vmem>>, %arg3: memref<1x128xf32, #tpu.memory_space<vmem>>, %arg4: memref<2x128x128xf32, #tpu.memory_space<vmem>>, %arg5: memref<2x1x128xf32, #tpu.memory_space<vmem>>, %arg6: memref<2x128x128xf32, #tpu.memory_space<vmem>>, %arg7: memref<2x1x128xf32, #tpu.memory_space<vmem>>, %arg8: memref<128x128xf32, #tpu.memory_space<vmem>>, %arg9: memref<1x128xf32, #tpu.memory_space<vmem>>, %arg10: memref<8x128xf32, #tpu.memory_space<vmem>>) attributes {dimension_semantics = [#tpu.dimension_semantics<parallel>], iteration_bounds = array<i64: 2>, scalar_prefetch = 0 : i64, scratch_operands = 0 : i64, tpu.core_type = #tpu.core_type<tc>, window_params = [{transform_indices = @transform_0, window_bounds = array<i64: 8, 128>}, {pipeline_mode = #tpu.pipeline_mode<synchronous>, transform_indices = @transform_1, window_bounds = array<i64: 128, 128>}, {pipeline_mode = #tpu.pipeline_mode<synchronous>, transform_indices = @transform_2, window_bounds = array<i64: 1, 128>}, {pipeline_mode = #tpu.pipeline_mode<synchronous>, transform_indices = @transform_3, window_bounds = array<i64: 2, 128, 128>}, {pipeline_mode = #tpu.pipeline_mode<synchronous>, transform_indices = @transform_4, window_bounds = array<i64: 2, 1, 128>}, {pipeline_mode = #tpu.pipeline_mode<synchronous>, transform_indices = @transform_5, window_bounds = array<i64: 2, 128, 128>}, {pipeline_mode = #tpu.pipeline_mode<synchronous>, transform_indices = @transform_6, window_bounds = array<i64: 2, 1, 128>}, {pipeline_mode = #tpu.pipeline_mode<synchronous>, transform_indices = @transform_7, window_bounds = array<i64: 128, 128>}, {pipeline_mode = #tpu.pipeline_mode<synchronous>, transform_indices = @transform_8, window_bounds = array<i64: 1, 128>}, {transform_indices = @transform_9, window_bounds = array<i64: 8, 128>}]} {
    %c0 = arith.constant 0 : index
    %c0_0 = arith.constant 0 : index
    %0 = vector.load %arg1[%c0, %c0_0] : memref<8x128xf32, #tpu.memory_space<vmem>>, vector<8x128xf32>
    %c0_1 = arith.constant 0 : index
    %c0_2 = arith.constant 0 : index
    %1 = vector.load %arg2[%c0_1, %c0_2] : memref<128x128xf32, #tpu.memory_space<vmem>>, vector<128x128xf32>
    %cst = arith.constant dense<0.000000e+00> : vector<8x128xf32>
    %2 = tpu.matmul %0, %1, %cst {dimension_numbers = #tpu.dot_dimension_numbers<[1], [0], [0], [1], [0, 0, 1, 1], [], []>} : vector<8x128xf32>, vector<128x128xf32>, vector<8x128xf32> -> vector<8x128xf32>
    %c0_3 = arith.constant 0 : index
    %c0_4 = arith.constant 0 : index
    %3 = vector.load %arg3[%c0_3, %c0_4] : memref<1x128xf32, #tpu.memory_space<vmem>>, vector<1x128xf32>
    %4 = vector.broadcast %3 : vector<1x128xf32> to vector<8x128xf32>
    %5 = arith.addf %2, %4 : vector<8x128xf32>
    %cst_5 = arith.constant 0.000000e+00 : f32
    %6 = vector.broadcast %cst_5 : f32 to vector<8x128xf32>
    %7 = arith.maximumf %5, %6 : vector<8x128xf32>
    %c0_6 = arith.constant 0 : index
    %c0_7 = arith.constant 0 : index
    %c0_8 = arith.constant 0 : index
    %8 = vector.load %arg4[%c0_6, %c0_7, %c0_8] : memref<2x128x128xf32, #tpu.memory_space<vmem>>, vector<1x128x128xf32>
    %9 = vector.shape_cast %8 : vector<1x128x128xf32> to vector<128x128xf32>
    %cst_9 = arith.constant dense<0.000000e+00> : vector<8x128xf32>
    %10 = tpu.matmul %7, %9, %cst_9 {dimension_numbers = #tpu.dot_dimension_numbers<[1], [0], [0], [1], [0, 0, 1, 1], [], []>} : vector<8x128xf32>, vector<128x128xf32>, vector<8x128xf32> -> vector<8x128xf32>
    %c0_10 = arith.constant 0 : index
    %c0_11 = arith.constant 0 : index
    %c0_12 = arith.constant 0 : index
    %11 = vector.load %arg5[%c0_10, %c0_11, %c0_12] : memref<2x1x128xf32, #tpu.memory_space<vmem>>, vector<1x1x128xf32>
    %12 = vector.shape_cast %11 : vector<1x1x128xf32> to vector<1x128xf32>
    %13 = vector.broadcast %12 : vector<1x128xf32> to vector<8x128xf32>
    %14 = arith.addf %10, %13 : vector<8x128xf32>
    %cst_13 = arith.constant 0.000000e+00 : f32
    %15 = vector.broadcast %cst_13 : f32 to vector<8x128xf32>
    %16 = arith.maximumf %14, %15 : vector<8x128xf32>
    %c0_14 = arith.constant 0 : index
    %c0_15 = arith.constant 0 : index
    %c0_16 = arith.constant 0 : index
    %17 = vector.load %arg6[%c0_14, %c0_15, %c0_16] : memref<2x128x128xf32, #tpu.memory_space<vmem>>, vector<1x128x128xf32>
    %18 = vector.shape_cast %17 : vector<1x128x128xf32> to vector<128x128xf32>
    %cst_17 = arith.constant dense<0.000000e+00> : vector<8x128xf32>
    %19 = tpu.matmul %16, %18, %cst_17 {dimension_numbers = #tpu.dot_dimension_numbers<[1], [0], [0], [1], [0, 0, 1, 1], [], []>} : vector<8x128xf32>, vector<128x128xf32>, vector<8x128xf32> -> vector<8x128xf32>
    %c0_18 = arith.constant 0 : index
    %c0_19 = arith.constant 0 : index
    %c0_20 = arith.constant 0 : index
    %20 = vector.load %arg7[%c0_18, %c0_19, %c0_20] : memref<2x1x128xf32, #tpu.memory_space<vmem>>, vector<1x1x128xf32>
    %21 = vector.shape_cast %20 : vector<1x1x128xf32> to vector<1x128xf32>
    %22 = vector.broadcast %21 : vector<1x128xf32> to vector<8x128xf32>
    %23 = arith.addf %19, %22 : vector<8x128xf32>
    %24 = arith.addf %7, %23 : vector<8x128xf32>
    %cst_21 = arith.constant 0.000000e+00 : f32
    %25 = vector.broadcast %cst_21 : f32 to vector<8x128xf32>
    %26 = arith.maximumf %24, %25 : vector<8x128xf32>
    %c1 = arith.constant 1 : index
    %c0_22 = arith.constant 0 : index
    %c0_23 = arith.constant 0 : index
    %27 = vector.load %arg4[%c1, %c0_22, %c0_23] : memref<2x128x128xf32, #tpu.memory_space<vmem>>, vector<1x128x128xf32>
    %28 = vector.shape_cast %27 : vector<1x128x128xf32> to vector<128x128xf32>
    %cst_24 = arith.constant dense<0.000000e+00> : vector<8x128xf32>
    %29 = tpu.matmul %26, %28, %cst_24 {dimension_numbers = #tpu.dot_dimension_numbers<[1], [0], [0], [1], [0, 0, 1, 1], [], []>} : vector<8x128xf32>, vector<128x128xf32>, vector<8x128xf32> -> vector<8x128xf32>
    %c1_25 = arith.constant 1 : index
    %c0_26 = arith.constant 0 : index
    %c0_27 = arith.constant 0 : index
    %30 = vector.load %arg5[%c1_25, %c0_26, %c0_27] : memref<2x1x128xf32, #tpu.memory_space<vmem>>, vector<1x1x128xf32>
    %31 = vector.shape_cast %30 : vector<1x1x128xf32> to vector<1x128xf32>
    %32 = vector.broadcast %31 : vector<1x128xf32> to vector<8x128xf32>
    %33 = arith.addf %29, %32 : vector<8x128xf32>
    %cst_28 = arith.constant 0.000000e+00 : f32
    %34 = vector.broadcast %cst_28 : f32 to vector<8x128xf32>
    %35 = arith.maximumf %33, %34 : vector<8x128xf32>
    %c1_29 = arith.constant 1 : index
    %c0_30 = arith.constant 0 : index
    %c0_31 = arith.constant 0 : index
    %36 = vector.load %arg6[%c1_29, %c0_30, %c0_31] : memref<2x128x128xf32, #tpu.memory_space<vmem>>, vector<1x128x128xf32>
    %37 = vector.shape_cast %36 : vector<1x128x128xf32> to vector<128x128xf32>
    %cst_32 = arith.constant dense<0.000000e+00> : vector<8x128xf32>
    %38 = tpu.matmul %35, %37, %cst_32 {dimension_numbers = #tpu.dot_dimension_numbers<[1], [0], [0], [1], [0, 0, 1, 1], [], []>} : vector<8x128xf32>, vector<128x128xf32>, vector<8x128xf32> -> vector<8x128xf32>
    %c1_33 = arith.constant 1 : index
    %c0_34 = arith.constant 0 : index
    %c0_35 = arith.constant 0 : index
    %39 = vector.load %arg7[%c1_33, %c0_34, %c0_35] : memref<2x1x128xf32, #tpu.memory_space<vmem>>, vector<1x1x128xf32>
    %40 = vector.shape_cast %39 : vector<1x1x128xf32> to vector<1x128xf32>
    %41 = vector.broadcast %40 : vector<1x128xf32> to vector<8x128xf32>
    %42 = arith.addf %38, %41 : vector<8x128xf32>
    %43 = arith.addf %26, %42 : vector<8x128xf32>
    %cst_36 = arith.constant 0.000000e+00 : f32
    %44 = vector.broadcast %cst_36 : f32 to vector<8x128xf32>
    %45 = arith.maximumf %43, %44 : vector<8x128xf32>
    %c0_37 = arith.constant 0 : index
    %c0_38 = arith.constant 0 : index
    %46 = vector.load %arg8[%c0_37, %c0_38] : memref<128x128xf32, #tpu.memory_space<vmem>>, vector<128x128xf32>
    %cst_39 = arith.constant dense<0.000000e+00> : vector<8x128xf32>
    %47 = tpu.matmul %45, %46, %cst_39 {dimension_numbers = #tpu.dot_dimension_numbers<[1], [0], [0], [1], [0, 0, 1, 1], [], []>} : vector<8x128xf32>, vector<128x128xf32>, vector<8x128xf32> -> vector<8x128xf32>
    %c0_40 = arith.constant 0 : index
    %c0_41 = arith.constant 0 : index
    %48 = vector.load %arg9[%c0_40, %c0_41] : memref<1x128xf32, #tpu.memory_space<vmem>>, vector<1x128xf32>
    %49 = vector.broadcast %48 : vector<1x128xf32> to vector<8x128xf32>
    %50 = arith.addf %47, %49 : vector<8x128xf32>
    %c0_42 = arith.constant 0 : index
    %c0_43 = arith.constant 0 : index
    %51 = vector.load %arg10[%c0_42, %c0_43] : memref<8x128xf32, #tpu.memory_space<vmem>>, vector<8x128xf32>
    tpu.vector_store %arg10[%c0_42, %c0_43], %50 {strides = array<i32>} : memref<8x128xf32, #tpu.memory_space<vmem>>, vector<8x128xf32>,
    return
  }
  func.func @transform_0(%arg0: i32) -> (i32, i32) {
    %c0_i32 = arith.constant 0 : i32
    %c0_i32_0 = arith.constant 0 : i32
    return %arg0, %c0_i32 : i32, i32
  }
  func.func @transform_1(%arg0: i32) -> (i32, i32) {
    %c0_i32 = arith.constant 0 : i32
    %c0_i32_0 = arith.constant 0 : i32
    %c0_i32_1 = arith.constant 0 : i32
    return %c0_i32, %c0_i32_0 : i32, i32
  }
  func.func @transform_2(%arg0: i32) -> (i32, i32) {
    %c0_i32 = arith.constant 0 : i32
    %c0_i32_0 = arith.constant 0 : i32
    %c0_i32_1 = arith.constant 0 : i32
    return %c0_i32, %c0_i32_0 : i32, i32
  }
  func.func @transform_3(%arg0: i32) -> (i32, i32, i32) {
    %c0_i32 = arith.constant 0 : i32
    %c0_i32_0 = arith.constant 0 : i32
    %c0_i32_1 = arith.constant 0 : i32
    %c0_i32_2 = arith.constant 0 : i32
    return %c0_i32, %c0_i32_0, %c0_i32_1 : i32, i32, i32
  }
  func.func @transform_4(%arg0: i32) -> (i32, i32, i32) {
    %c0_i32 = arith.constant 0 : i32
    %c0_i32_0 = arith.constant 0 : i32
    %c0_i32_1 = arith.constant 0 : i32
    %c0_i32_2 = arith.constant 0 : i32
    return %c0_i32, %c0_i32_0, %c0_i32_1 : i32, i32, i32
  }
  func.func @transform_5(%arg0: i32) -> (i32, i32, i32) {
    %c0_i32 = arith.constant 0 : i32
    %c0_i32_0 = arith.constant 0 : i32
    %c0_i32_1 = arith.constant 0 : i32
    %c0_i32_2 = arith.constant 0 : i32
    return %c0_i32, %c0_i32_0, %c0_i32_1 : i32, i32, i32
  }
  func.func @transform_6(%arg0: i32) -> (i32, i32, i32) {
    %c0_i32 = arith.constant 0 : i32
    %c0_i32_0 = arith.constant 0 : i32
    %c0_i32_1 = arith.constant 0 : i32
    %c0_i32_2 = arith.constant 0 : i32
    return %c0_i32, %c0_i32_0, %c0_i32_1 : i32, i32, i32
  }
  func.func @transform_7(%arg0: i32) -> (i32, i32) {
    %c0_i32 = arith.constant 0 : i32
    %c0_i32_0 = arith.constant 0 : i32
    %c0_i32_1 = arith.constant 0 : i32
    return %c0_i32, %c0_i32_0 : i32, i32
  }
  func.func @transform_8(%arg0: i32) -> (i32, i32) {
    %c0_i32 = arith.constant 0 : i32
    %c0_i32_0 = arith.constant 0 : i32
    %c0_i32_1 = arith.constant 0 : i32
    return %c0_i32, %c0_i32_0 : i32, i32
  }
  func.func @transform_9(%arg0: i32) -> (i32, i32) {
    %c0_i32 = arith.constant 0 : i32
    %c0_i32_0 = arith.constant 0 : i32
    return %arg0, %c0_i32 : i32, i32
  }
}

module attributes {stable_mosaic.version = 11 : i64} {
  func.func @resmlp_kernel(%arg0: i32, %arg1: memref<8x128xf32, #tpu.memory_space<vmem>>, %arg2: memref<128x128xf32, #tpu.memory_space<vmem>>, %arg3: memref<1x128xf32, #tpu.memory_space<vmem>>, %arg4: memref<2x128x128xf32, #tpu.memory_space<vmem>>, %arg5: memref<2x1x128xf32, #tpu.memory_space<vmem>>, %arg6: memref<2x128x128xf32, #tpu.memory_space<vmem>>, %arg7: memref<2x1x128xf32, #tpu.memory_space<vmem>>, %arg8: memref<128x128xf32, #tpu.memory_space<vmem>>, %arg9: memref<1x128xf32, #tpu.memory_space<vmem>>, %arg10: memref<8x128xf32, #tpu.memory_space<vmem>>) attributes {dimension_semantics = [#tpu.dimension_semantics<parallel>], iteration_bounds = array<i64: 2>, scalar_prefetch = 0 : i64, scratch_operands = 0 : i64, tpu.core_type = #tpu.core_type<tc>, window_params = [{transform_indices = @transform_0, window_bounds = array<i64: 8, 128>}, {pipeline_mode = #tpu.pipeline_mode<synchronous>, transform_indices = @transform_1, window_bounds = array<i64: 128, 128>}, {pipeline_mode = #tpu.pipeline_mode<synchronous>, transform_indices = @transform_2, window_bounds = array<i64: 1, 128>}, {pipeline_mode = #tpu.pipeline_mode<synchronous>, transform_indices = @transform_3, window_bounds = array<i64: 2, 128, 128>}, {pipeline_mode = #tpu.pipeline_mode<synchronous>, transform_indices = @transform_4, window_bounds = array<i64: 2, 1, 128>}, {pipeline_mode = #tpu.pipeline_mode<synchronous>, transform_indices = @transform_5, window_bounds = array<i64: 2, 128, 128>}, {pipeline_mode = #tpu.pipeline_mode<synchronous>, transform_indices = @transform_6, window_bounds = array<i64: 2, 1, 128>}, {pipeline_mode = #tpu.pipeline_mode<synchronous>, transform_indices = @transform_7, window_bounds = array<i64: 128, 128>}, {pipeline_mode = #tpu.pipeline_mode<synchronous>, transform_indices = @transform_8, window_bounds = array<i64: 1, 128>}, {transform_indices = @transform_9, window_bounds = array<i64: 8, 128>}]} {
    %c0 = arith.constant 0 : index
    %c0_0 = arith.constant 0 : index
    %0 = vector.load %arg1[%c0, %c0_0] : memref<8x128xf32, #tpu.memory_space<vmem>>, vector<8x128xf32>
    %c0_1 = arith.constant 0 : index
    %c0_2 = arith.constant 0 : index
    %1 = vector.load %arg2[%c0_1, %c0_2] : memref<128x128xf32, #tpu.memory_space<vmem>>, vector<128x128xf32>
    %cst = arith.constant dense<0.000000e+00> : vector<8x128xf32>
    %2 = tpu.matmul %0, %1, %cst {dimension_numbers = #tpu.dot_dimension_numbers<[1], [0], [0], [1], [0, 0, 1, 1], [], []>} : vector<8x128xf32>, vector<128x128xf32>, vector<8x128xf32> -> vector<8x128xf32>
    %c0_3 = arith.constant 0 : index
    %c0_4 = arith.constant 0 : index
    %3 = vector.load %arg3[%c0_3, %c0_4] : memref<1x128xf32, #tpu.memory_space<vmem>>, vector<1x128xf32>
    %4 = vector.broadcast %3 : vector<1x128xf32> to vector<8x128xf32>
    %5 = arith.addf %2, %4 : vector<8x128xf32>
    %cst_5 = arith.constant 0.000000e+00 : f32
    %6 = vector.broadcast %cst_5 : f32 to vector<8x128xf32>
    %7 = arith.maximumf %5, %6 : vector<8x128xf32>
    %c0_6 = arith.constant 0 : index
    %c0_7 = arith.constant 0 : index
    %c0_8 = arith.constant 0 : index
    %8 = vector.load %arg4[%c0_6, %c0_7, %c0_8] : memref<2x128x128xf32, #tpu.memory_space<vmem>>, vector<1x128x128xf32>
    %9 = vector.shape_cast %8 : vector<1x128x128xf32> to vector<128x128xf32>
    %cst_9 = arith.constant dense<0.000000e+00> : vector<8x128xf32>
    %10 = tpu.matmul %7, %9, %cst_9 {dimension_numbers = #tpu.dot_dimension_numbers<[1], [0], [0], [1], [0, 0, 1, 1], [], []>} : vector<8x128xf32>, vector<128x128xf32>, vector<8x128xf32> -> vector<8x128xf32>
    %c0_10 = arith.constant 0 : index
    %c0_11 = arith.constant 0 : index
    %c0_12 = arith.constant 0 : index
    %11 = vector.load %arg5[%c0_10, %c0_11, %c0_12] : memref<2x1x128xf32, #tpu.memory_space<vmem>>, vector<1x1x128xf32>
    %12 = vector.shape_cast %11 : vector<1x1x128xf32> to vector<1x128xf32>
    %13 = vector.broadcast %12 : vector<1x128xf32> to vector<8x128xf32>
    %14 = arith.addf %10, %13 : vector<8x128xf32>
    %cst_13 = arith.constant 0.000000e+00 : f32
    %15 = vector.broadcast %cst_13 : f32 to vector<8x128xf32>
    %16 = arith.maximumf %14, %15 : vector<8x128xf32>
    %c0_14 = arith.constant 0 : index
    %c0_15 = arith.constant 0 : index
    %c0_16 = arith.constant 0 : index
    %17 = vector.load %arg6[%c0_14, %c0_15, %c0_16] : memref<2x128x128xf32, #tpu.memory_space<vmem>>, vector<1x128x128xf32>
    %18 = vector.shape_cast %17 : vector<1x128x128xf32> to vector<128x128xf32>
    %cst_17 = arith.constant dense<0.000000e+00> : vector<8x128xf32>
    %19 = tpu.matmul %16, %18, %cst_17 {dimension_numbers = #tpu.dot_dimension_numbers<[1], [0], [0], [1], [0, 0, 1, 1], [], []>} : vector<8x128xf32>, vector<128x128xf32>, vector<8x128xf32> -> vector<8x128xf32>
    %c0_18 = arith.constant 0 : index
    %c0_19 = arith.constant 0 : index
    %c0_20 = arith.constant 0 : index
    %20 = vector.load %arg7[%c0_18, %c0_19, %c0_20] : memref<2x1x128xf32, #tpu.memory_space<vmem>>, vector<1x1x128xf32>
    %21 = vector.shape_cast %20 : vector<1x1x128xf32> to vector<1x128xf32>
    %22 = vector.broadcast %21 : vector<1x128xf32> to vector<8x128xf32>
    %23 = arith.addf %19, %22 : vector<8x128xf32>
    %24 = arith.addf %7, %23 : vector<8x128xf32>
    %cst_21 = arith.constant 0.000000e+00 : f32
    %25 = vector.broadcast %cst_21 : f32 to vector<8x128xf32>
    %26 = arith.maximumf %24, %25 : vector<8x128xf32>
    %c1 = arith.constant 1 : index
    %c0_22 = arith.constant 0 : index
    %c0_23 = arith.constant 0 : index
    %27 = vector.load %arg4[%c1, %c0_22, %c0_23] : memref<2x128x128xf32, #tpu.memory_space<vmem>>, vector<1x128x128xf32>
    %28 = vector.shape_cast %27 : vector<1x128x128xf32> to vector<128x128xf32>
    %cst_24 = arith.constant dense<0.000000e+00> : vector<8x128xf32>
    %29 = tpu.matmul %26, %28, %cst_24 {dimension_numbers = #tpu.dot_dimension_numbers<[1], [0], [0], [1], [0, 0, 1, 1], [], []>} : vector<8x128xf32>, vector<128x128xf32>, vector<8x128xf32> -> vector<8x128xf32>
    %c1_25 = arith.constant 1 : index
    %c0_26 = arith.constant 0 : index
    %c0_27 = arith.constant 0 : index
    %30 = vector.load %arg5[%c1_25, %c0_26, %c0_27] : memref<2x1x128xf32, #tpu.memory_space<vmem>>, vector<1x1x128xf32>
    %31 = vector.shape_cast %30 : vector<1x1x128xf32> to vector<1x128xf32>
    %32 = vector.broadcast %31 : vector<1x128xf32> to vector<8x128xf32>
    %33 = arith.addf %29, %32 : vector<8x128xf32>
    %cst_28 = arith.constant 0.000000e+00 : f32
    %34 = vector.broadcast %cst_28 : f32 to vector<8x128xf32>
    %35 = arith.maximumf %33, %34 : vector<8x128xf32>
    %c1_29 = arith.constant 1 : index
    %c0_30 = arith.constant 0 : index
    %c0_31 = arith.constant 0 : index
    %36 = vector.load %arg6[%c1_29, %c0_30, %c0_31] : memref<2x128x128xf32, #tpu.memory_space<vmem>>, vector<1x128x128xf32>
    %37 = vector.shape_cast %36 : vector<1x128x128xf32> to vector<128x128xf32>
    %cst_32 = arith.constant dense<0.000000e+00> : vector<8x128xf32>
    %38 = tpu.matmul %35, %37, %cst_32 {dimension_numbers = #tpu.dot_dimension_numbers<[1], [0], [0], [1], [0, 0, 1, 1], [], []>} : vector<8x128xf32>, vector<128x128xf32>, vector<8x128xf32> -> vector<8x128xf32>
    %c1_33 = arith.constant 1 : index
    %c0_34 = arith.constant 0 : index
    %c0_35 = arith.constant 0 : index
    %39 = vector.load %arg7[%c1_33, %c0_34, %c0_35] : memref<2x1x128xf32, #tpu.memory_space<vmem>>, vector<1x1x128xf32>
    %40 = vector.shape_cast %39 : vector<1x1x128xf32> to vector<1x128xf32>
    %41 = vector.broadcast %40 : vector<1x128xf32> to vector<8x128xf32>
    %42 = arith.addf %38, %41 : vector<8x128xf32>
    %43 = arith.addf %26, %42 : vector<8x128xf32>
    %cst_36 = arith.constant 0.000000e+00 : f32
    %44 = vector.broadcast %cst_36 : f32 to vector<8x128xf32>
    %45 = arith.maximumf %43, %44 : vector<8x128xf32>
    %c0_37 = arith.constant 0 : index
    %c0_38 = arith.constant 0 : index
    %46 = vector.load %arg8[%c0_37, %c0_38] : memref<128x128xf32, #tpu.memory_space<vmem>>, vector<128x128xf32>
    %cst_39 = arith.constant dense<0.000000e+00> : vector<8x128xf32>
    %47 = tpu.matmul %45, %46, %cst_39 {dimension_numbers = #tpu.dot_dimension_numbers<[1], [0], [0], [1], [0, 0, 1, 1], [], []>} : vector<8x128xf32>, vector<128x128xf32>, vector<8x128xf32> -> vector<8x128xf32>
    %c0_40 = arith.constant 0 : index
    %c0_41 = arith.constant 0 : index
    %48 = vector.load %arg9[%c0_40, %c0_41] : memref<1x128xf32, #tpu.memory_space<vmem>>, vector<1x128xf32>
    %49 = vector.broadcast %48 : vector<1x128xf32> to vector<8x128xf32>
    %50 = arith.addf %47, %49 : vector<8x128xf32>
    %c0_42 = arith.constant 0 : index
    %c0_43 = arith.constant 0 : index
    %51 = vector.load %arg10[%c0_42, %c0_43] : memref<8x128xf32, #tpu.memory_space<vmem>>, vector<8x128xf32>
    tpu.vector_store %arg10[%c0_42, %c0_43], %50 {strides = array<i32>} : memref<8x128xf32, #tpu.memory_space<vmem>>, vector<8x128xf32>,
    return
  }
  func.func @transform_0(%arg0: i32) -> (i32, i32) {
    %c0_i32 = arith.constant 0 : i32
    %c0_i32_0 = arith.constant 0 : i32
    return %arg0, %c0_i32 : i32, i32
  }
  func.func @transform_1(%arg0: i32) -> (i32, i32) {
    %c0_i32 = arith.constant 0 : i32
    %c0_i32_0 = arith.constant 0 : i32
    %c0_i32_1 = arith.constant 0 : i32
    return %c0_i32, %c0_i32_0 : i32, i32
  }
  func.func @transform_2(%arg0: i32) -> (i32, i32) {
    %c0_i32 = arith.constant 0 : i32
    %c0_i32_0 = arith.constant 0 : i32
    %c0_i32_1 = arith.constant 0 : i32
    return %c0_i32, %c0_i32_0 : i32, i32
  }
  func.func @transform_3(%arg0: i32) -> (i32, i32, i32) {
    %c0_i32 = arith.constant 0 : i32
    %c0_i32_0 = arith.constant 0 : i32
    %c0_i32_1 = arith.constant 0 : i32
    %c0_i32_2 = arith.constant 0 : i32
    return %c0_i32, %c0_i32_0, %c0_i32_1 : i32, i32, i32
  }
  func.func @transform_4(%arg0: i32) -> (i32, i32, i32) {
    %c0_i32 = arith.constant 0 : i32
    %c0_i32_0 = arith.constant 0 : i32
    %c0_i32_1 = arith.constant 0 : i32
    %c0_i32_2 = arith.constant 0 : i32
    return %c0_i32, %c0_i32_0, %c0_i32_1 : i32, i32, i32
  }
  func.func @transform_5(%arg0: i32) -> (i32, i32, i32) {
    %c0_i32 = arith.constant 0 : i32
    %c0_i32_0 = arith.constant 0 : i32
    %c0_i32_1 = arith.constant 0 : i32
    %c0_i32_2 = arith.constant 0 : i32
    return %c0_i32, %c0_i32_0, %c0_i32_1 : i32, i32, i32
  }
  func.func @transform_6(%arg0: i32) -> (i32, i32, i32) {
    %c0_i32 = arith.constant 0 : i32
    %c0_i32_0 = arith.constant 0 : i32
    %c0_i32_1 = arith.constant 0 : i32
    %c0_i32_2 = arith.constant 0 : i32
    return %c0_i32, %c0_i32_0, %c0_i32_1 : i32, i32, i32
  }
  func.func @transform_7(%arg0: i32) -> (i32, i32) {
    %c0_i32 = arith.constant 0 : i32
    %c0_i32_0 = arith.constant 0 : i32
    %c0_i32_1 = arith.constant 0 : i32
    return %c0_i32, %c0_i32_0 : i32, i32
  }
  func.func @transform_8(%arg0: i32) -> (i32, i32) {
    %c0_i32 = arith.constant 0 : i32
    %c0_i32_0 = arith.constant 0 : i32
    %c0_i32_1 = arith.constant 0 : i32
    return %c0_i32, %c0_i32_0 : i32, i32
  }
  func.func @transform_9(%arg0: i32) -> (i32, i32) {
    %c0_i32 = arith.constant 0 : i32
    %c0_i32_0 = arith.constant 0 : i32
    return %arg0, %c0_i32 : i32, i32
  }
}

</mosaic_0001>

<bundles_post_ra>
// kernel: tpu_custom_call.1
= control target key start
LH: loop header
LB: loop body
LE: loop exit
PB: predicated region body
PF: predicated region fallthrough
CT: control target
= control target key end

     0   :  { %s2338_s0 = inlined_call_operand.hbm [shape: f32[16,128], index: 0, kind: input, shape index: {}]   ;;  %s2339_s1 = inlined_call_operand.hbm [shape: f32[128,128], index: 1, kind: input, shape index: {}]   ;;  %s2340_s2 = inlined_call_operand.vmem [shape: f32[1,128], index: 2, kind: input, shape index: {}]   ;;  %s2341_s3 = inlined_call_operand.hbm [shape: f32[2,128,128], index: 3, kind: input, shape index: {}]   ;;  %s2342_s4 = inlined_call_operand.vmem [shape: f32[2,1,128], index: 4, kind: input, shape index: {}]   ;;  %s2343_s5 = inlined_call_operand.hbm [shape: f32[2,128,128], index: 5, kind: input, shape index: {}]   ;;  %s2344_s6 = inlined_call_operand.vmem [shape: f32[2,1,128], index: 6, kind: input, shape index: {}]   ;;  %s2345_s7 = inlined_call_operand.hbm [shape: f32[128,128], index: 7, kind: input, shape index: {}]   ;;  %s2346_s8 = inlined_call_operand.vmem [shape: f32[1,128], index: 8, kind: input, shape index: {}]   ;;  %s2347_s9 = inlined_call_operand.hbm [shape: f32[16,128], index: 9, kind: output, shape index: {}]  }
   0x1   :  { %2352 = sst [smem:[#allocation16_spill]] %s2339_s1 }
   0x2   :  { %2353 = sst [smem:[#allocation17_spill]] %s2347_s9 }
   0x3   :  { %14 = vsyncpa [#allocation3], 0 }
   0x4   :  { %16 = vsyncpa [#allocation3 + $0x1], 0 }
   0x5   :  { %17 = vsyncpa [#allocation6], 0 }
   0x6   :  { %18 = vsyncpa [#allocation9], 0 }
   0x7   :  { %19 = vsyncpa [#allocation4], 0 }
   0x8   :  { %21 = vsyncpa [#allocation4 + $0x1], 0  ;;  %s1954_s30 = smov 0   ;;  %s1956_s10 = smov 0  }
   0x9   :  { %s1958_s11 = smov 0   ;;  %s1960_s12 = smov 0  }
   0xa LB: > { %s1893_s13 = smov [#allocation5]   ;;  %s1975_s15 = sadd.s32 4294967295, %s1891_s12   ;;  %s1891_s12 = sphi %s1960_s12, %s2376_s12   ;;  %s1887_s11 = sphi %s1958_s11, %s2375_s11   ;;  %s1883_s10 = sphi %s1956_s10, %s2374_s10   ;;  %s1879_s30 = sphi %s1954_s30, %s2373_s30  }
   0xb   : > { %s264_s14 = sshll.u32 %s1893_s13, 4  ;;  %p1100_p0 = scmp.ge.s32.totalorder %s1891_s12, 1  ;;  %s1980_s14 = int_to_ptr.vmem [resolvable:$true] %s264_s14 }
   0xc   : > { %p2349_p1 = scmp.eq.s32.totalorder %s1975_s15, 0  ;;  %p252_p2 = scmp.lt.s32.totalorder %s1891_s12, 3 }
   0xd   : > { %s1894_s17 = smov [#allocation8]   ;;  %s1895_s20 = smov [#allocation7]  }
   0xe   : > { %p1982_p3 = pnand %p1100_p0, %p252_p2  ;;  %s296_s18 = sshll.u32 %s1894_s17, 4  ;;  %s1995_s18 = int_to_ptr.vmem [resolvable:$true] %s296_s18 }
   0xf   : > { %s280_s21 = sshll.u32 %s1895_s20, 4  ;;  %s2356_s1 = sld [smem:[#allocation16_spill]]  ;;  %s1997_s21 = int_to_ptr.vmem [resolvable:$true] %s280_s21 }
  0x10   : > { %s2354_s16 = scalar_select %p1982_p3, 1, 0 }
  0x11   : > { %p1603_p5 = pneg %p1982_p3 }
  0x13   : > { %p1991_p6 = pnand %p1603_p5, %p2349_p1 }
  0x15   : > { %s1675_s24 = scalar_lea.hbm %s2356_s1, 2048  ;;  %p2007_p8 = pneg %p1991_p6 }
  0x16   : > { %p1676_p7 = scmp.ne.s32.totalorder %s2356_s1, %s1675_s24  ;;  %p1682_p11 = scmp.lt.u32.totalorder %s1675_s24, %s2356_s1 }
  0x18   : > { %p1678_p9 = pnand %p2007_p8, %p1676_p7 }
  0x1a   : > { %p1679_p10 = pneg %p1678_p9 }
  0x1c   : > { %p1684_p12 = pnand %p1682_p11, %p1679_p10 }
  0x1e   : > { %1687 = shalt.err (!%p1684_p12)
}
  0x1f   : > { %s1688_s13 = scalar_lea.vmem %s1980_s14, 2048  ;;  %p1696_p5 = scmp.lt.s32.totalorder %s1980_s14, %s1980_s14 }
  0x20   : > { %p1689_p13 = scmp.ne.s32.totalorder %s1980_s14, %s1688_s13  ;;  %p1697_p4 = scmp.lt.s32.totalorder %s1688_s13, %s1688_s13 }
  0x22   : > { %p1691_p0 = pnand %p1689_p13, %p2007_p8  ;;  %p1698_p7 = por %p1697_p4, %p1696_p5 }
  0x24   : > { %p1692_p2 = pneg %p1691_p0 }
  0x26   : > { %p1699_p9 = pnand %p1698_p7, %p1692_p2 }
  0x28   : > { %1702 = shalt.err (!%p1699_p9)
}
  0x29   : > { %s1896_s17 = smov 128   ;;  %s1897_s20 = smov 8  }
  0x2a   : > { %1606 = dma.hbm_to_vmem [thread:$0]  (!%p1991_p6), %s2356_s1, 2048, %s1980_s14, [#allocation6], %s1896_s17, %s1896_s17, %s1897_s20  }
  0x2b   : > { %s1703_s26 = scalar_lea.hbm %s2343_s5, 4096 }
  0x2c   : > { %p1704_p4 = scmp.ne.s32.totalorder %s2343_s5, %s1703_s26  ;;  %p1710_p12 = scmp.lt.u32.totalorder %s1703_s26, %s2343_s5 }
  0x2e   : > { %p1706_p10 = pnand %p1704_p4, %p2007_p8 }
  0x30   : > { %p1707_p11 = pneg %p1706_p10 }
  0x32   : > { %p1712_p13 = pnand %p1710_p12, %p1707_p11 }
  0x34   : > { %1715 = shalt.err (!%p1712_p13)
}
  0x35   : > { %s1716_s14 = scalar_lea.vmem %s1995_s18, 4096  ;;  %p1724_p7 = scmp.lt.s32.totalorder %s1995_s18, %s1995_s18 }
  0x36   : > { %p1717_p0 = scmp.ne.s32.totalorder %s1995_s18, %s1716_s14  ;;  %p1725_p9 = scmp.lt.s32.totalorder %s1716_s14, %s1716_s14 }
  0x38   : > { %p1719_p2 = pnand %p1717_p0, %p2007_p8  ;;  %p1726_p4 = por %p1725_p9, %p1724_p7 }
  0x3a   : > { %p1720_p5 = pneg %p1719_p2 }
  0x3c   : > { %p1727_p10 = pnand %p1726_p4, %p1720_p5 }
  0x3e   : > { %1730 = shalt.err (!%p1727_p10)
}
  0x3f   : > { %1612 = dma.hbm_to_vmem [thread:$0]  (!%p1991_p6), %s2343_s5, 4096, %s1995_s18, [#allocation9], %s1896_s17, %s1896_s17, %s1897_s20  }
  0x40   : > { %s1731_s25 = scalar_lea.hbm %s2341_s3, 4096 }
  0x41   : > { %p1732_p11 = scmp.ne.s32.totalorder %s2341_s3, %s1731_s25  ;;  %p1738_p0 = scmp.lt.u32.totalorder %s1731_s25, %s2341_s3 }
  0x43   : > { %p1734_p12 = pnand %p1732_p11, %p2007_p8 }
  0x45   : > { %p1735_p13 = pneg %p1734_p12 }
  0x47   : > { %p1740_p2 = pnand %p1738_p0, %p1735_p13 }
  0x49   : > { %1743 = shalt.err (!%p1740_p2)
}
  0x4a   : > { %s1744_s18 = scalar_lea.vmem %s1997_s21, 4096  ;;  %p1752_p4 = scmp.lt.s32.totalorder %s1997_s21, %s1997_s21 }
  0x4b   : > { %p1745_p5 = scmp.ne.s32.totalorder %s1997_s21, %s1744_s18  ;;  %p1753_p10 = scmp.lt.s32.totalorder %s1744_s18, %s1744_s18 }
  0x4d   : > { %p1747_p7 = pnand %p1745_p5, %p2007_p8  ;;  %p1754_p11 = por %p1753_p10, %p1752_p4 }
  0x4f   : > { %p1748_p9 = pneg %p1747_p7 }
  0x51   : > { %p1755_p12 = pnand %p1754_p11, %p1748_p9 }
  0x53   : > { %1758 = shalt.err (!%p1755_p12)
}
  0x54   : > { %1609 = dma.hbm_to_vmem [thread:$0]  (!%p1991_p6), %s2341_s3, 4096, %s1997_s21, [#allocation6], %s1896_s17, %s1896_s17, %s1897_s20  }
  0x55   : > { %s1898_s22 = smov [#allocation10]   ;;  %s1759_s26 = scalar_lea.hbm %s2345_s7, 2048 }
  0x56   : > { %s312_s23 = sshll.u32 %s1898_s22, 4  ;;  %p1760_p13 = scmp.ne.s32.totalorder %s2345_s7, %s1759_s26  ;;  %s313_s23 = int_to_ptr.vmem [resolvable:$true] %s312_s23 }
  0x57   : > { %p1766_p5 = scmp.lt.u32.totalorder %s1759_s26, %s2345_s7 }
  0x58   : > { %p1762_p0 = pnand %p1760_p13, %p2007_p8 }
  0x5a   : > { %p1763_p2 = pneg %p1762_p0 }
  0x5c   : > { %p1768_p7 = pnand %p1766_p5, %p1763_p2 }
  0x5e   : > { %1771 = shalt.err (!%p1768_p7)
}
  0x5f   : > { %s1772_s21 = scalar_lea.vmem %s313_s23, 2048  ;;  %p1780_p11 = scmp.lt.s32.totalorder %s313_s23, %s313_s23 }
  0x60   : > { %p1773_p9 = scmp.ne.s32.totalorder %s313_s23, %s1772_s21  ;;  %p1781_p12 = scmp.lt.s32.totalorder %s1772_s21, %s1772_s21 }
  0x62   : > { %p1775_p4 = pnand %p1773_p9, %p2007_p8  ;;  %p1782_p1 = por %p1781_p12, %p1780_p11 }
  0x64   : > { %p1776_p10 = pneg %p1775_p4 }
  0x66   : > { %p1783_p3 = pnand %p1782_p1, %p1776_p10 }
  0x68   : > { %1786 = shalt.err (!%p1783_p3)
}
  0x69   : > { %1615 = dma.hbm_to_vmem [thread:$0]  (!%p1991_p6), %s2345_s7, 2048, %s313_s23, [#allocation9], %s1896_s17, %s1896_s17, %s1897_s20  }
  0x6a   : > { %s1099_s19 = sadd.s32 4294967294, %s1891_s12   ;;  %s2106_s27 = sadd.s32 1, %s1891_s12  }
  0x6b   : > { %s31_s22 = ssub.s32 %s1891_s12, %s2106_s27  ;;  %s34_s24 = sadd.s32 1, %s1887_s11 }
  0x6c   : > { %p32_p1 = scmp.eq.s32.totalorder %s31_s22, 0  ;;  %p41_p3 = scmp.ne.s32.totalorder %s1887_s11, %s1883_s10 }
  0x6d   : > { %p42_p8 = scmp.eq.s32.totalorder %s1891_s12, 0  ;;  %p47_p13 = scmp.ne.s32.totalorder %s1883_s10, %s1879_s30 }
  0x6e   : > { %s2117_s25 = scalar_select %p32_p1, %s1887_s11, %s34_s24  }
  0x6f   : > { %p2119_p0 = por %p42_p8, %p41_p3  ;;  %p2359_p2 = scmp.eq.s32.totalorder %s1975_s15, 0 }
  0x70   : > { %p239_p5 = scmp.eq.s32.totalorder %s1975_s15, 1  ;;  %p245_p7 = scmp.eq.s32.totalorder %s1099_s19, 1 }
  0x71   : > { %p2125_p6 = por %p2359_p2, %p47_p13  ;;  %p1628_p9 = scmp.lt.s32.totalorder %s1891_s12, 2 }
  0x72   : > { %s329_s20 = sand.u32 1, %s1887_s11   ;;  %p2132_p4 = por %p239_p5, %p41_p3 }
  0x73   : > { %p2136_p10 = por %p245_p7, %p47_p13  ;;  %s1106_s29 = sshll.u32 %s329_s20, 3 }
  0x74   : > { %s2361_s23 = scalar_select %p2132_p4, 1, 0 }
  0x75   : > { %s2362_s28 = scalar_select %p2136_p10, 1, 0 }
  0x76   : > { %s1107_s13 = sshll.u32 %s1891_s12, 7  ;;  %s333_s9 = scalar_lea.vmem [#allocation2], %s1106_s29 }
  0x77   : > { %s2144_s14 = scalar_lea.hbm %s2338_s0, %s1107_s13  ;;  %s340_s19 = sshll.u32 %s333_s9, 4  ;;  %s2146_s19 = int_to_ptr.vmem [resolvable:$true] %s340_s19 }
  0x78   : > { %p2150_p11 = pnand %p1628_p9, %p2119_p0  ;;  %s330_s24 = scalar_lea.sflag [#allocation3], %s329_s20 }
  0x79   : > { %s1787_s1 = scalar_lea.hbm %s2144_s14, 128  ;;  %s1792_s18 = scalar_lea.hbm %s2338_s0, 256 }
  0x7a   : > { %p1788_p12 = scmp.ne.s32.totalorder %s2144_s14, %s1787_s1  ;;  %p1789_p1 = pneg %p2150_p11 }
  0x7b   : > { %p1793_p13 = scmp.lt.u32.totalorder %s2144_s14, %s2338_s0  ;;  %p1794_p0 = scmp.lt.u32.totalorder %s1792_s18, %s1787_s1 }
  0x7c   : > { %p1790_p3 = pnand %p1789_p1, %p1788_p12  ;;  %p1796_p5 = scmp.lt.u32.totalorder %s1787_s1, %s2144_s14 }
  0x7d   : > { %p1795_p2 = por %p1794_p0, %p1793_p13 }
  0x7e   : > { %p1791_p8 = pneg %p1790_p3 }
  0x7f   : > { %p1797_p7 = por %p1796_p5, %p1795_p2 }
  0x81   : > { %p1798_p9 = pnand %p1797_p7, %p1791_p8 }
  0x83   : > { %1801 = shalt.err (!%p1798_p9)
}
  0x84   : > { %s1802_s20 = scalar_lea.vmem %s2146_s19, 128  ;;  %s1899_s9 = smov [#allocation2]  }
  0x85   : > { %p1803_p12 = scmp.ne.s32.totalorder %s2146_s19, %s1802_s20  ;;  %s1807_s29 = sshll.u32 %s1899_s9, 4  ;;  %s1808_s29 = int_to_ptr.vmem [resolvable:$false] %s1807_s29 }
  0x86   : > { %s1809_s13 = scalar_lea.vmem %s1808_s29, 256  ;;  %p1810_p4 = scmp.lt.s32.totalorder %s2146_s19, %s1808_s29 }
  0x87   : > { %p1805_p3 = pnand %p1803_p12, %p1789_p1  ;;  %p1811_p13 = scmp.lt.s32.totalorder %s1809_s13, %s1802_s20 }
  0x89   : > { %p1806_p10 = pneg %p1805_p3  ;;  %p1812_p0 = por %p1811_p13, %p1810_p4 }
  0x8b   : > { %p1813_p2 = pnand %p1812_p0, %p1806_p10 }
  0x8d   : > { %1816 = shalt.err (!%p1813_p2)
}
  0x8e   : > { %1619 = dma.hbm_to_vmem [thread:$0]  (!%p2150_p11), %s2144_s14, 128, %s2146_s19, %s330_s24  }
  0x8f   : > { %p2364_p8 = scmp.ne.s32.totalorder %s2354_s16, 0 }
  0x90   : > { %s2182_s1 = sand.u32 (!%p2364_p8), 1, %s1883_s10  }
  0x91   : > { %349 = sbr.rel (%p2364_p8) target bundleno = 1505 (0x5e1), region = 56  ;;  %s1109_s18 = sshll.u32 (!%p2364_p8), %s2182_s1, 3 }
  0x92   : > { %s352_s26 = scalar_lea.sflag (!%p2364_p8), [#allocation3], %s2182_s1  ;;  %s2188_s21 = scalar_lea.vmem (!%p2364_p8), [#allocation2], %s1109_s18 }
  0x98   : > { %1862 = dma.done.wait (%p2125_p6), %s352_s26, 128  }
  0x99   : > { %1864 = vsyncadd (%p2125_p6), %s352_s26, 4294967168  ;;  %p2365_p4 = scmp.eq.s32.totalorder %s1975_s15, 0 }
  0x9b   : > { %1866 = dma.done.wait (%p2365_p4), [#allocation6], 6144   ;;  %p2366_p10 = pmov %p2365_p4 }
  0x9c   : > { %p2367_p11 = pmov %p2365_p4 }
  0x9d   : > { %1868 = vsyncadd (%p2366_p10), [#allocation6], 4294961152 }
  0x9e   : > { %1870 = dma.done.wait (%p2367_p11), [#allocation9], 6144   ;;  %p2368_p1 = pmov %p2365_p4 }
  0x9f   : > { %v1900_v0 = vmov 0.0|0.0   ;;  %vm1901_vm0 = vmmov 0   ;;  %v1902_v1 = vmov 0.0   ;;  %v407_v2 = vld [vmem:[#allocation5] sm:$0xff]  ;;  %v408_v3 = vld [vmem:[#allocation5 + $0x8] sm:$0xff]  ;;  %v409_v4 = vld [vmem:[#allocation5 + $0x10] sm:$0xff] }
  0xa0   : > { %1872 = vsyncadd (%p2368_p1), [#allocation9], 4294961152  ;;  %1439 = vmatprep.subr.bf16.mxu0 %v1900_v0  ;;  %1261 = vmatprep.mubr.msk.f32.mxu0 %vm1901_vm0, %v1902_v1  ;;  %v1440_v5 = vpack.c.bf16 %v408_v3, %v407_v2  ;;  %v410_v6 = vld [vmem:[#allocation5 + $0x18] sm:$0xff]  ;;  %v411_v8 = vld [vmem:[#allocation5 + $0x20] sm:$0xff]  ;;  %s1124_s16 = sshll.u32 %s1975_s15, 7  ;;  %s405_s17 = scalar_lea.vmem [#allocation11], %s1109_s18 }
  0xa1   : > { %1463 = vmatprep.subr.bf16.mxu1 %v1900_v0  ;;  %1296 = vmatprep.mubr.msk.f32.mxu1 %vm1901_vm0, %v1902_v1  ;;  %v1443_v7 = vpack.c.bf16 %v410_v6, %v409_v4  ;;  %v412_v9 = vld [vmem:[#allocation5 + $0x28] sm:$0xff]  ;;  %v501_v10 = vld [vmem:[#allocation7] sm:$0xff]  ;;  %v503_v12 = vld [vmem:[#allocation7 + $0x10] sm:$0xff]  ;;  %s991_s14 = sshll.u32 %s405_s17, 4  ;;  %s2369_s24 = sld [smem:[#allocation17_spill]]  ;;  %s2296_s14 = int_to_ptr.vmem [resolvable:$true] %s991_s14 }
  0xa2   : > { %1441 = vmatpush3.bf16.msra.mxu0 %v1440_v5  ;;  %v502_v11 = vld [vmem:[#allocation7 + $0x8] sm:$0xff]  ;;  %v504_v13 = vld [vmem:[#allocation7 + $0x18] sm:$0xff]  ;;  %v1446_v14 = vpack.c.bf16 %v412_v9, %v411_v8  ;;  %v413_v16 = vld [vmem:[#allocation5 + $0x30] sm:$0xff]  ;;  %s978_s9 = scalar_lea.sflag [#allocation4], %s2182_s1  ;;  %s1817_s29 = scalar_lea.vmem %s2296_s14, 128 }
  0xa3   : > { %1442 = vmatprep.subr.bf16.mxu0 %v1900_v0  ;;  %v1464_v15 = vpack.c.bf16 %v502_v11, %v501_v10  ;;  %v414_v17 = vld [vmem:[#allocation5 + $0x38] sm:$0xff]  ;;  %v1467_v18 = vpack.c.bf16 %v504_v13, %v503_v12  ;;  %v505_v19 = vld [vmem:[#allocation7 + $0x20] sm:$0xff]  ;;  %v506_v20 = vld [vmem:[#allocation7 + $0x28] sm:$0xff]  ;;  %p1818_p6 = scmp.ne.s32.totalorder %s2296_s14, %s1817_s29  ;;  %p2370_p5 = scmp.ne.s32.totalorder %s2361_s23, 0 }
  0xa4   : > { %v1449_v21 = vpack.c.bf16 %v414_v17, %v413_v16  ;;  %v415_v22 = vld [vmem:[#allocation5 + $0x40] sm:$0xff]  ;;  %v416_v23 = vld [vmem:[#allocation5 + $0x48] sm:$0xff]  ;;  %v1470_v24 = vpack.c.bf16 %v506_v20, %v505_v19  ;;  %v507_v25 = vld [vmem:[#allocation7 + $0x30] sm:$0xff]  ;;  %s1903_s15 = smov [#allocation11]  }
  0xa5   : > { %1465 = vmatpush3.bf16.msra.mxu1 %v1464_v15  ;;  %v508_v26 = vld [vmem:[#allocation7 + $0x38] sm:$0xff]  ;;  %v1452_v27 = vpack.c.bf16 %v416_v23, %v415_v22  ;;  %v417_v28 = vld [vmem:[#allocation5 + $0x50] sm:$0xff]  ;;  %v509_v31 = vld [vmem:[#allocation7 + $0x40] sm:$0xff]  ;;  %p1819_p7 = pnand %p1818_p6, %p2370_p5  ;;  %s1821_s18 = sshll.u32 %s1903_s15, 4  ;;  %s1822_s18 = int_to_ptr.vmem [resolvable:$false] %s1821_s18 }
  0xa6   : > { %1444 = vmatpush3.bf16.msra.mxu0 %v1443_v7  ;;  %1466 = vmatprep.subr.bf16.mxu1 %v1900_v0  ;;  %v418_v29 = vld [vmem:[#allocation5 + $0x58] sm:$0xff]  ;;  %v1473_v30 = vpack.c.bf16 %v508_v26, %v507_v25  ;;  %v510_v32 = vld [vmem:[#allocation7 + $0x48] sm:$0xff]  ;;  %v419_v34 = vld [vmem:[#allocation5 + $0x60] sm:$0xff]  ;;  %s1823_s13 = scalar_lea.vmem %s1822_s18, 256  ;;  %p1824_p12 = scmp.lt.s32.totalorder %s2296_s14, %s1822_s18 }
  0xa7   : > { %1445 = vmatprep.subr.bf16.mxu0 %v1900_v0  ;;  %v1455_v33 = vpack.c.bf16 %v418_v29, %v417_v28  ;;  %v420_v35 = vld [vmem:[#allocation5 + $0x68] sm:$0xff]  ;;  %v1476_v36 = vpack.c.bf16 %v510_v32, %v509_v31  ;;  %v511_v37 = vld [vmem:[#allocation7 + $0x50] sm:$0xff]  ;;  %v512_v38 = vld [vmem:[#allocation7 + $0x58] sm:$0xff]  ;;  %s2294_s20 = scalar_lea.hbm %s2369_s24, %s1124_s16  ;;  %p1820_p9 = pneg %p1819_p7 }
  0xa8   : > { %v1458_v39 = vpack.c.bf16 %v420_v35, %v419_v34  ;;  %v421_v40 = vld [vmem:[#allocation5 + $0x70] sm:$0xff]  ;;  %v422_v41 = vld [vmem:[#allocation5 + $0x78] sm:$0xff]  ;;  %v1479_v42 = vpack.c.bf16 %v512_v38, %v511_v37  ;;  %v513_v43 = vld [vmem:[#allocation7 + $0x60] sm:$0xff]  ;;  %p1825_p3 = scmp.lt.s32.totalorder %s1823_s13, %s1817_s29 }
  0xa9   : > { %1468 = vmatpush3.bf16.msra.mxu1 %v1467_v18  ;;  %v514_v44 = vld [vmem:[#allocation7 + $0x68] sm:$0xff]  ;;  %v1461_v45 = vpack.c.bf16 %v422_v41, %v421_v40  ;;  %v406_v47 = vld [vmem:[%s2188_s21] sm:$0xff]  ;;  %v595_v51 = vld [vmem:[#allocation8] sm:$0xff] }
  0xaa   : > { %1447 = vmatpush3.bf16.msra.mxu0 %v1446_v14  ;;  %1469 = vmatprep.subr.bf16.mxu1 %v1900_v0  ;;  %v1482_v46 = vpack.c.bf16 %v514_v44, %v513_v43  ;;  %v515_v48 = vld [vmem:[#allocation7 + $0x70] sm:$0xff]  ;;  %v516_v49 = vld [vmem:[#allocation7 + $0x78] sm:$0xff]  ;;  %v596_v52 = vld [vmem:[#allocation8 + $0x8] sm:$0xff]  ;;  %p1826_p13 = por %p1825_p3, %p1824_p12 }
  0xab   : > { %1448 = vmatprep.subr.bf16.mxu0 %v1900_v0  ;;  %v1485_v50 = vpack.c.bf16 %v516_v49, %v515_v48  ;;  %v597_v53 = vld [vmem:[#allocation8 + $0x10] sm:$0xff]  ;;  %v1488_v54 = vpack.c.bf16 %v596_v52, %v595_v51  ;;  %v598_v55 = vld [vmem:[#allocation8 + $0x18] sm:$0xff]  ;;  %v599_v57 = vld [vmem:[#allocation8 + $0x20] sm:$0xff] }
  0xac   : > { %v1491_v56 = vpack.c.bf16 %v598_v55, %v597_v53  ;;  %v600_v58 = vld [vmem:[#allocation8 + $0x28] sm:$0xff]  ;;  %v601_v60 = vld [vmem:[#allocation8 + $0x30] sm:$0xff]  ;;  %v602_v61 = vld [vmem:[#allocation8 + $0x38] sm:$0xff]  ;;  %p1827_p0 = pnand %p1826_p13, %p1820_p9 }
  0xad   : > { %1471 = vmatpush3.bf16.msra.mxu1 %v1470_v24  ;;  %v1494_v59 = vpack.c.bf16 %v600_v58, %v599_v57  ;;  %v1497_v62 = vpack.c.bf16 %v602_v61, %v601_v60  ;;  %v603_v63 = vld [vmem:[#allocation8 + $0x40] sm:$0xff]  ;;  %v604_v2 = vld [vmem:[#allocation8 + $0x48] sm:$0xff]  ;;  %v605_v4 = vld [vmem:[#allocation8 + $0x50] sm:$0xff] }
  0xae   : > { %1450 = vmatpush3.bf16.msra.mxu0 %v1449_v21  ;;  %1472 = vmatprep.subr.bf16.mxu1 %v1900_v0  ;;  %v1500_v3 = vpack.c.bf16 %v604_v2, %v603_v63  ;;  %v606_v5 = vld [vmem:[#allocation8 + $0x58] sm:$0xff]  ;;  %v607_v7 = vld [vmem:[#allocation8 + $0x60] sm:$0xff]  ;;  %v608_v8 = vld [vmem:[#allocation8 + $0x68] sm:$0xff] }
  0xaf   : > { %1451 = vmatprep.subr.bf16.mxu0 %v1900_v0  ;;  %v1503_v6 = vpack.c.bf16 %v606_v5, %v605_v4  ;;  %v1506_v9 = vpack.c.bf16 %v608_v8, %v607_v7  ;;  %v1115_v10 = vld [vmem:[%s2340_s2] ss:$0 sm:$0xff]  ;;  %v610_v16 = vld [vmem:[#allocation8 + $0x78] sm:$0xff]  ;;  %v691_v18 = vld [vmem:[#allocation7 + $0x80] sm:$0xff] }
  0xb0   : > { %v609_v15 = vld [vmem:[#allocation8 + $0x70] sm:$0xff]  ;;  %v692_v19 = vld [vmem:[#allocation7 + $0x88] sm:$0xff]  ;;  %v694_v22 = vld [vmem:[#allocation7 + $0x98] sm:$0xff] }
  0xb1   : > { %1474 = vmatpush3.bf16.msra.mxu1 %v1473_v30  ;;  %v1509_v17 = vpack.c.bf16 %v610_v16, %v609_v15  ;;  %v693_v20 = vld [vmem:[#allocation7 + $0x90] sm:$0xff]  ;;  %v1512_v21 = vpack.c.bf16 %v692_v19, %v691_v18  ;;  %v695_v24 = vld [vmem:[#allocation7 + $0xa0] sm:$0xff]  ;;  %v696_v25 = vld [vmem:[#allocation7 + $0xa8] sm:$0xff] }
  0xb2   : > { %1453 = vmatpush3.bf16.msra.mxu0 %v1452_v27  ;;  %1475 = vmatprep.subr.bf16.mxu1 %v1900_v0  ;;  %v1515_v23 = vpack.c.bf16 %v694_v22, %v693_v20  ;;  %v1518_v26 = vpack.c.bf16 %v696_v25, %v695_v24  ;;  %v697_v27 = vld [vmem:[#allocation7 + $0xb0] sm:$0xff]  ;;  %v698_v28 = vld [vmem:[#allocation7 + $0xb8] sm:$0xff]  ;;  %v699_v30 = vld [vmem:[#allocation7 + $0xc0] sm:$0xff] }
  0xb3   : > { %1454 = vmatprep.subr.bf16.mxu0 %v1900_v0  ;;  %v1521_v29 = vpack.c.bf16 %v698_v28, %v697_v27  ;;  %v700_v31 = vld [vmem:[#allocation7 + $0xc8] sm:$0xff]  ;;  %v702_v34 = vld [vmem:[#allocation7 + $0xd8] sm:$0xff]  ;;  %v703_v41 = vld [vmem:[#allocation7 + $0xe0] sm:$0xff] }
  0xb4   : > { %v1524_v32 = vpack.c.bf16 %v700_v31, %v699_v30  ;;  %v705_v44 = vld [vmem:[#allocation7 + $0xf0] sm:$0xff]  ;;  %v788_v48 = vld [vmem:[#allocation8 + $0x88] sm:$0xff]  ;;  %v790_v51 = vld [vmem:[#allocation8 + $0x98] sm:$0xff] }
  0xb5   : > { %1477 = vmatpush3.bf16.msra.mxu1 %v1476_v36  ;;  %v1116_v36 = vld [vmem:[%s2342_s4] ss:$0 sm:$0xff]  ;;  %v791_v53 = vld [vmem:[#allocation8 + $0xa0] sm:$0xff]  ;;  %v794_v57 = vld [vmem:[#allocation8 + $0xb8] sm:$0xff] }
  0xb6   : > { %1456 = vmatpush3.bf16.msra.mxu0 %v1455_v33  ;;  %1478 = vmatprep.subr.bf16.mxu1 %v1900_v0  ;;  %v701_v33 = vld [vmem:[#allocation7 + $0xd0] sm:$0xff]  ;;  %v796_v60 = vld [vmem:[#allocation8 + $0xc8] sm:$0xff]  ;;  %v798_v63 = vld [vmem:[#allocation8 + $0xd8] sm:$0xff] }
  0xb7   : > { %1457 = vmatprep.subr.bf16.mxu0 %v1900_v0  ;;  %v1527_v35 = vpack.c.bf16 %v702_v34, %v701_v33  ;;  %v789_v49 = vld [vmem:[#allocation8 + $0x90] sm:$0xff]  ;;  %v800_v4 = vld [vmem:[#allocation8 + $0xe8] sm:$0xff]  ;;  %v802_v15 = vld [vmem:[#allocation8 + $0xf8] sm:$0xff] }
  0xb8   : > { %v1539_v52 = vpack.c.bf16 %v790_v51, %v789_v49  ;;  %v884_v18 = vld [vmem:[#allocation10 + $0x8] sm:$0xff]  ;;  %v885_v19 = vld [vmem:[#allocation10 + $0x10] sm:$0xff]  ;;  %v890_v24 = vld [vmem:[#allocation10 + $0x38] sm:$0xff] }
  0xb9   : > { %1480 = vmatpush3.bf16.msra.mxu1 %v1479_v42  ;;  %v704_v42 = vld [vmem:[#allocation7 + $0xe8] sm:$0xff]  ;;  %v894_v30 = vld [vmem:[#allocation10 + $0x58] sm:$0xff] }
  0xba   : > { %1459 = vmatpush3.bf16.msra.mxu0 %v1458_v39  ;;  %1481 = vmatprep.subr.bf16.mxu1 %v1900_v0  ;;  %v1530_v43 = vpack.c.bf16 %v704_v42, %v703_v41  ;;  %v892_v27 = vld [vmem:[#allocation10 + $0x48] sm:$0xff]  ;;  %v898_v41 = vld [vmem:[#allocation10 + $0x78] sm:$0xff] }
  0xbb   : > { %1460 = vmatprep.subr.bf16.mxu0 %v1900_v0 }
  0xbd   : > { %1483 = vmatpush3.bf16.msra.mxu1 %v1482_v46 }
  0xbe   : > { %1462 = vmatpush3.bf16.msra.mxu0 %v1461_v45  ;;  %1484 = vmatprep.subr.bf16.mxu1 %v1900_v0  ;;  %v706_v45 = vld [vmem:[#allocation7 + $0xf8] sm:$0xff] }
  0xbf   : > { %1487 = vmatprep.subr.bf16.mxu0 %v1900_v0  ;;  %v1533_v46 = vpack.c.bf16 %v706_v45, %v705_v44 }
  0xc1   : > { %1262 = vmatmul.mubr.f32.vlgmr.msra.gmra.mrb[0].mxu0 %v406_v47  ;;  %1486 = vmatpush3.bf16.msra.mxu1 %v1485_v50  ;;  %v787_v47 = vld [vmem:[#allocation8 + $0x80] sm:$0xff] }
  0xc2   : > { %1331 = vmatprep.mubr.msk.f32.mxu0 %vm1901_vm0, %v1902_v1  ;;  %1511 = vmatprep.subr.bf16.mxu1 %v1900_v0  ;;  %v1536_v50 = vpack.c.bf16 %v788_v48, %v787_v47 }
  0xc3   : > { %1489 = vmatpush3.bf16.msra.mxu0 %v1488_v54  ;;  %v792_v54 = vld [vmem:[#allocation8 + $0xa8] sm:$0xff] }
  0xc4   : > { %1490 = vmatprep.subr.bf16.mxu0 %v1900_v0  ;;  %v1542_v55 = vpack.c.bf16 %v792_v54, %v791_v53 }
  0xc7   : > { %1492 = vmatpush3.bf16.msra.mxu0 %v1491_v56  ;;  %v793_v56 = vld [vmem:[#allocation8 + $0xb0] sm:$0xff] }
  0xc8   : > { %1493 = vmatprep.subr.bf16.mxu0 %v1900_v0  ;;  %v1545_v58 = vpack.c.bf16 %v794_v57, %v793_v56 }
  0xcb   : > { %1495 = vmatpush3.bf16.msra.mxu0 %v1494_v59  ;;  %v795_v59 = vld [vmem:[#allocation8 + $0xc0] sm:$0xff] }
  0xcc   : > { %1496 = vmatprep.subr.bf16.mxu0 %v1900_v0  ;;  %v1548_v61 = vpack.c.bf16 %v796_v60, %v795_v59 }
  0xcf   : > { %1498 = vmatpush3.bf16.msra.mxu0 %v1497_v62  ;;  %v797_v62 = vld [vmem:[#allocation8 + $0xd0] sm:$0xff] }
  0xd0   : > { %1499 = vmatprep.subr.bf16.mxu0 %v1900_v0  ;;  %v1551_v2 = vpack.c.bf16 %v798_v63, %v797_v62 }
  0xd3   : > { %1501 = vmatpush3.bf16.msra.mxu0 %v1500_v3  ;;  %v799_v3 = vld [vmem:[#allocation8 + $0xe0] sm:$0xff] }
  0xd4   : > { %1502 = vmatprep.subr.bf16.mxu0 %v1900_v0  ;;  %v1554_v5 = vpack.c.bf16 %v800_v4, %v799_v3 }
  0xd7   : > { %1504 = vmatpush3.bf16.msra.mxu0 %v1503_v6  ;;  %v1117_v6 = vld [vmem:[%s2344_s6] ss:$0 sm:$0xff] }
  0xd8   : > { %1505 = vmatprep.subr.bf16.mxu0 %v1900_v0 }
  0xdb   : > { %1507 = vmatpush3.bf16.msra.mxu0 %v1506_v9 }
  0xdc   : > { %1508 = vmatprep.subr.bf16.mxu0 %v1900_v0 }
  0xdf   : > { %1510 = vmatpush3.bf16.msra.mxu0 %v1509_v17  ;;  %v883_v17 = vld [vmem:[#allocation10] sm:$0xff] }
  0xe0   : > { %1535 = vmatprep.subr.bf16.mxu0 %v1900_v0  ;;  %v1560_v20 = vpack.c.bf16 %v884_v18, %v883_v17 }
 0x194   : > { %v496_v11 = vpop.f32.mrb[0].mxu0 }
 0x195   : > { %v2237_v12 = vadd.f32 %v1115_v10, %v496_v11  ;;  %v1263_v13 = vpop.f32.mrb[1].mxu0 }
 0x196   : > { %v801_v13 = vld [vmem:[#allocation8 + $0xf0] sm:$0xff] }
 0x197   : > { %v500_v14 = vmax.f32 %v2237_v12, 0.0  ;;  %v1557_v16 = vpack.c.bf16 %v802_v15, %v801_v13  ;;  %v887_v12 = vld [vmem:[#allocation10 + $0x20] sm:$0xff] }
 0x199   : > { %1297 = vmatmul.mubr.f32.vlgmr.msra.gmra.mrb[0].mxu1 %v500_v14 }
 0x19a   : > { %1366 = vmatprep.mubr.msk.f32.mxu1 %vm1901_vm0, %v1902_v1  ;;  %1513 = vmatpush3.bf16.msra.mxu1 %v1512_v21  ;;  %v886_v21 = vld [vmem:[#allocation10 + $0x18] sm:$0xff] }
 0x19b   : > { %1514 = vmatprep.subr.bf16.mxu1 %v1900_v0  ;;  %v1563_v22 = vpack.c.bf16 %v886_v21, %v885_v19 }
 0x19e   : > { %1516 = vmatpush3.bf16.msra.mxu1 %v1515_v23 }
 0x19f   : > { %1517 = vmatprep.subr.bf16.mxu1 %v1900_v0 }
 0x1a2   : > { %1519 = vmatpush3.bf16.msra.mxu1 %v1518_v26  ;;  %v891_v26 = vld [vmem:[#allocation10 + $0x40] sm:$0xff] }
 0x1a3   : > { %1520 = vmatprep.subr.bf16.mxu1 %v1900_v0  ;;  %v1572_v28 = vpack.c.bf16 %v892_v27, %v891_v26 }
 0x1a6   : > { %1522 = vmatpush3.bf16.msra.mxu1 %v1521_v29  ;;  %v893_v29 = vld [vmem:[#allocation10 + $0x50] sm:$0xff] }
 0x1a7   : > { %1523 = vmatprep.subr.bf16.mxu1 %v1900_v0  ;;  %v1575_v31 = vpack.c.bf16 %v894_v30, %v893_v29 }
 0x1aa   : > { %1525 = vmatpush3.bf16.msra.mxu1 %v1524_v32  ;;  %v1119_v32 = vld [vmem:[%s2342_s4 + $0x1] ss:$0 sm:$0xff] }
 0x1ab   : > { %1526 = vmatprep.subr.bf16.mxu1 %v1900_v0 }
 0x1ae   : > { %1528 = vmatpush3.bf16.msra.mxu1 %v1527_v35 }
 0x1af   : > { %1529 = vmatprep.subr.bf16.mxu1 %v1900_v0 }
 0x1b2   : > { %1531 = vmatpush3.bf16.msra.mxu1 %v1530_v43  ;;  %v1121_v43 = vld [vmem:[%s2344_s6 + $0x1] ss:$0 sm:$0xff] }
 0x1b3   : > { %1532 = vmatprep.subr.bf16.mxu1 %v1900_v0 }
 0x1b6   : > { %1534 = vmatpush3.bf16.msra.mxu1 %v1533_v46 }
 0x1b7   : > { %1559 = vmatprep.subr.bf16.mxu1 %v1900_v0 }
 0x26c   : > { %v590_v37 = vpop.f32.mrb[0].mxu1 }
 0x26d   : > { %v591_v38 = vadd.f32 %v1116_v36, %v590_v37  ;;  %v1298_v39 = vpop.f32.mrb[1].mxu1  ;;  %v895_v37 = vld [vmem:[#allocation10 + $0x60] sm:$0xff] }
 0x26f   : > { %v594_v40 = vmax.f32 %v591_v38, 0.0  ;;  %v896_v38 = vld [vmem:[#allocation10 + $0x68] sm:$0xff] }
 0x270   : > { %v1578_v39 = vpack.c.bf16 %v896_v38, %v895_v37 }
 0x271   : > { %1332 = vmatmul.mubr.f32.vlgmr.msra.gmra.mrb[2].mxu0 %v594_v40  ;;  %v897_v40 = vld [vmem:[#allocation10 + $0x70] sm:$0xff] }
 0x272   : > { %1401 = vmatprep.mubr.msk.f32.mxu0 %vm1901_vm0, %v1902_v1  ;;  %1537 = vmatpush3.bf16.msra.mxu0 %v1536_v50  ;;  %v1581_v42 = vpack.c.bf16 %v898_v41, %v897_v40 }
 0x273   : > { %1538 = vmatprep.subr.bf16.mxu0 %v1900_v0 }
 0x276   : > { %1540 = vmatpush3.bf16.msra.mxu0 %v1539_v52 }
 0x277   : > { %1541 = vmatprep.subr.bf16.mxu0 %v1900_v0 }
 0x27a   : > { %1543 = vmatpush3.bf16.msra.mxu0 %v1542_v55 }
 0x27b   : > { %1544 = vmatprep.subr.bf16.mxu0 %v1900_v0 }
 0x27e   : > { %1546 = vmatpush3.bf16.msra.mxu0 %v1545_v58 }
 0x27f   : > { %1547 = vmatprep.subr.bf16.mxu0 %v1900_v0 }
 0x282   : > { %1549 = vmatpush3.bf16.msra.mxu0 %v1548_v61 }
 0x283   : > { %1550 = vmatprep.subr.bf16.mxu0 %v1900_v0 }
 0x286   : > { %1552 = vmatpush3.bf16.msra.mxu0 %v1551_v2 }
 0x287   : > { %1553 = vmatprep.subr.bf16.mxu0 %v1900_v0 }
 0x28a   : > { %1555 = vmatpush3.bf16.msra.mxu0 %v1554_v5 }
 0x28b   : > { %1556 = vmatprep.subr.bf16.mxu0 %v1900_v0 }
 0x28e   : > { %1558 = vmatpush3.bf16.msra.mxu0 %v1557_v16 }
 0x344   : > { %v684_v7 = vpop.f32.mrb[2].mxu0 }
 0x345   : > { %v685_v8 = vadd.f32 %v1117_v6, %v684_v7  ;;  %v1333_v9 = vpop.f32.mrb[3].mxu0 }
 0x347   : > { %v688_v10 = vadd.f32 %v685_v8, %v500_v14  ;;  %v888_v14 = vld [vmem:[#allocation10 + $0x28] sm:$0xff] }
 0x348   : > { %v1566_v23 = vpack.c.bf16 %v888_v14, %v887_v12 }
 0x349   : > { %v689_v11 = vmax.f32 %v688_v10, 0.0 }
 0x34b   : > { %1367 = vmatmul.mubr.f32.vlgmr.msra.gmra.mrb[2].mxu1 %v689_v11 }
 0x34c   : > { %1436 = vmatprep.mubr.msk.f32.mxu1 %vm1901_vm0, %v1902_v1  ;;  %1561 = vmatpush3.bf16.msra.mxu1 %v1560_v20  ;;  %v889_v1 = vld [vmem:[#allocation10 + $0x30] sm:$0xff] }
 0x34d   : > { %1562 = vmatprep.subr.bf16.mxu1 %v1900_v0  ;;  %v1569_v25 = vpack.c.bf16 %v890_v24, %v889_v1 }
 0x350   : > { %1564 = vmatpush3.bf16.msra.mxu1 %v1563_v22 }
 0x351   : > { %1565 = vmatprep.subr.bf16.mxu1 %v1900_v0 }
 0x354   : > { %1567 = vmatpush3.bf16.msra.mxu1 %v1566_v23 }
 0x355   : > { %1568 = vmatprep.subr.bf16.mxu1 %v1900_v0 }
 0x358   : > { %1570 = vmatpush3.bf16.msra.mxu1 %v1569_v25 }
 0x359   : > { %1571 = vmatprep.subr.bf16.mxu1 %v1900_v0 }
 0x35c   : > { %1573 = vmatpush3.bf16.msra.mxu1 %v1572_v28 }
 0x35d   : > { %1574 = vmatprep.subr.bf16.mxu1 %v1900_v0 }
 0x360   : > { %1576 = vmatpush3.bf16.msra.mxu1 %v1575_v31 }
 0x361   : > { %1577 = vmatprep.subr.bf16.mxu1 %v1900_v0 }
 0x364   : > { %1579 = vmatpush3.bf16.msra.mxu1 %v1578_v39 }
 0x365   : > { %1580 = vmatprep.subr.bf16.mxu1 %v1900_v0  ;;  %v1122_v0 = vld [vmem:[%s2346_s8] ss:$0 sm:$0xff] }
 0x368   : > { %1582 = vmatpush3.bf16.msra.mxu1 %v1581_v42 }
 0x41e   : > { %v781_v33 = vpop.f32.mrb[2].mxu1 }
 0x41f   : > { %v782_v34 = vadd.f32 %v1119_v32, %v781_v33  ;;  %v1368_v35 = vpop.f32.mrb[3].mxu1 }
 0x421   : > { %v785_v36 = vmax.f32 %v782_v34, 0.0 }
 0x423   : > { %1402 = vmatmul.mubr.f32.vlgmr.msra.gmra.mrb[4].mxu0 %v785_v36 }
 0x4f6   : > { %v877_v44 = vpop.f32.mrb[4].mxu0 }
 0x4f7   : > { %v878_v45 = vadd.f32 %v1121_v43, %v877_v44  ;;  %v1403_v46 = vpop.f32.mrb[5].mxu0 }
 0x4f9   : > { %v881_v47 = vadd.f32 %v878_v45, %v689_v11 }
 0x4fb   : > { %v882_v48 = vmax.f32 %v881_v47, 0.0 }
 0x4fd   : > { %1437 = vmatmul.mubr.f32.vlgmr.msra.gmra.mrb[4].mxu1 %v882_v48 }
 0x5d0   : > { %v972_v49 = vpop.f32.mrb[4].mxu1 }
 0x5d1   : > { %v973_v50 = vadd.f32 %v1122_v0, %v972_v49  ;;  %v1438_v51 = vpop.f32.mrb[5].mxu1 }
 0x5d3   : > { %976 = vst [vmem:[%s405_s17] sm:$0xff] %v973_v50 }
 0x5d4   : > { %1830 = shalt.err (!%p1827_p0)
}
 0x5d5   : > { %s1831_s1 = scalar_lea.hbm %s2294_s20, 128  ;;  %s1835_s16 = scalar_lea.hbm %s2369_s24, 256 }
 0x5d6   : > { %p1832_p2 = scmp.ne.s32.totalorder %s2294_s20, %s1831_s1  ;;  %p1836_p10 = scmp.lt.u32.totalorder %s2294_s20, %s2369_s24 }
 0x5d7   : > { %p1837_p11 = scmp.lt.u32.totalorder %s1835_s16, %s1831_s1  ;;  %p1839_p6 = scmp.lt.u32.totalorder %s1831_s1, %s2294_s20 }
 0x5d8   : > { %p1833_p8 = pnand %p1832_p2, %p2370_p5 }
 0x5d9   : > { %p1838_p1 = por %p1837_p11, %p1836_p10 }
 0x5da   : > { %p1834_p4 = pneg %p1833_p8 }
 0x5db   : > { %p1840_p7 = por %p1839_p6, %p1838_p1 }
 0x5dd   : > { %p1841_p9 = pnand %p1840_p7, %p1834_p4 }
 0x5df   : > { %1844 = shalt.err (!%p1841_p9)
}
 0x5e0   : > { %1601 = dma.vmem_to_hbm [thread:$0]  (%p2370_p5), %s2296_s14, 128, %s2294_s20, %s978_s9  }
 0x5e1 PF: > { %s1003_s22 = sand.u32 1, %s1879_s30   ;;  %p2371_p12 = scmp.ne.s32.totalorder %s2362_s28, 0 }
 0x5e2   : > { %p2372_p3 = scmp.ge.s32.totalorder %s1891_s12, 2  ;;  %s1004_s29 = scalar_lea.sflag [#allocation4], %s1003_s22 }
 0x5e4   : > { %p1621_p13 = pnand %p2372_p3, %p2371_p12 }
 0x5e6   : > { %1874 = dma.done.wait (!%p1621_p13), %s1004_s29, 128  }
 0x5e7   : > { %1876 = vsyncadd (!%p1621_p13), %s1004_s29, 4294967168  ;;  %p24_p0 = scmp.ge.s32.totalorder %s2106_s27, 4   ;;  %s2373_s30 = smov %s1883_s10 }
 0x5e8   : > { %s2374_s10 = smov %s1887_s11  ;;  %s2375_s11 = smov %s2117_s25 }
 0x5e9   : > { %s2376_s12 = smov %s2106_s27  ;;  %26 = sbr.rel (!%p24_p0) target bundleno = 10 (0xa), region = 121 }
 0x5f0   :  { %1009 = vsyncpa [#allocation3], 1 }
 0x5f1   :  { %1011 = vsyncpa [#allocation3 + $0x1], 1 }
 0x5f2   :  { %1012 = vsyncpa [#allocation6], 1 }
 0x5f3   :  { %1013 = vsyncpa [#allocation9], 1 }
 0x5f4   :  { %1014 = vsyncpa [#allocation4], 1 }
 0x5f5   :  { %1016 = vsyncpa [#allocation4 + $0x1], 1 }

// kernel: tpu_custom_call.1
= control target key start
LH: loop header
LB: loop body
LE: loop exit
PB: predicated region body
PF: predicated region fallthrough
CT: control target
= control target key end

     0   :  { %s2338_s0 = inlined_call_operand.hbm [shape: f32[16,128], index: 0, kind: input, shape index: {}]   ;;  %s2339_s1 = inlined_call_operand.hbm [shape: f32[128,128], index: 1, kind: input, shape index: {}]   ;;  %s2340_s2 = inlined_call_operand.vmem [shape: f32[1,128], index: 2, kind: input, shape index: {}]   ;;  %s2341_s3 = inlined_call_operand.hbm [shape: f32[2,128,128], index: 3, kind: input, shape index: {}]   ;;  %s2342_s4 = inlined_call_operand.vmem [shape: f32[2,1,128], index: 4, kind: input, shape index: {}]   ;;  %s2343_s5 = inlined_call_operand.hbm [shape: f32[2,128,128], index: 5, kind: input, shape index: {}]   ;;  %s2344_s6 = inlined_call_operand.vmem [shape: f32[2,1,128], index: 6, kind: input, shape index: {}]   ;;  %s2345_s7 = inlined_call_operand.hbm [shape: f32[128,128], index: 7, kind: input, shape index: {}]   ;;  %s2346_s8 = inlined_call_operand.vmem [shape: f32[1,128], index: 8, kind: input, shape index: {}]   ;;  %s2347_s9 = inlined_call_operand.hbm [shape: f32[16,128], index: 9, kind: output, shape index: {}]  }
   0x1   :  { %2352 = sst [smem:[#allocation16_spill]] %s2339_s1 }
   0x2   :  { %2353 = sst [smem:[#allocation17_spill]] %s2347_s9 }
   0x3   :  { %14 = vsyncpa [#allocation3], 0 }
   0x4   :  { %16 = vsyncpa [#allocation3 + $0x1], 0 }
   0x5   :  { %17 = vsyncpa [#allocation6], 0 }
   0x6   :  { %18 = vsyncpa [#allocation9], 0 }
   0x7   :  { %19 = vsyncpa [#allocation4], 0 }
   0x8   :  { %21 = vsyncpa [#allocation4 + $0x1], 0  ;;  %s1954_s30 = smov 0   ;;  %s1956_s10 = smov 0  }
   0x9   :  { %s1958_s11 = smov 0   ;;  %s1960_s12 = smov 0  }
   0xa LB: > { %s1893_s13 = smov [#allocation5]   ;;  %s1975_s15 = sadd.s32 4294967295, %s1891_s12   ;;  %s1891_s12 = sphi %s1960_s12, %s2376_s12   ;;  %s1887_s11 = sphi %s1958_s11, %s2375_s11   ;;  %s1883_s10 = sphi %s1956_s10, %s2374_s10   ;;  %s1879_s30 = sphi %s1954_s30, %s2373_s30  }
   0xb   : > { %s264_s14 = sshll.u32 %s1893_s13, 4  ;;  %p1100_p0 = scmp.ge.s32.totalorder %s1891_s12, 1  ;;  %s1980_s14 = int_to_ptr.vmem [resolvable:$true] %s264_s14 }
   0xc   : > { %p2349_p1 = scmp.eq.s32.totalorder %s1975_s15, 0  ;;  %p252_p2 = scmp.lt.s32.totalorder %s1891_s12, 3 }
   0xd   : > { %s1894_s17 = smov [#allocation8]   ;;  %s1895_s20 = smov [#allocation7]  }
   0xe   : > { %p1982_p3 = pnand %p1100_p0, %p252_p2  ;;  %s296_s18 = sshll.u32 %s1894_s17, 4  ;;  %s1995_s18 = int_to_ptr.vmem [resolvable:$true] %s296_s18 }
   0xf   : > { %s280_s21 = sshll.u32 %s1895_s20, 4  ;;  %s2356_s1 = sld [smem:[#allocation16_spill]]  ;;  %s1997_s21 = int_to_ptr.vmem [resolvable:$true] %s280_s21 }
  0x10   : > { %s2354_s16 = scalar_select %p1982_p3, 1, 0 }
  0x11   : > { %p1603_p5 = pneg %p1982_p3 }
  0x13   : > { %p1991_p6 = pnand %p1603_p5, %p2349_p1 }
  0x15   : > { %s1675_s24 = scalar_lea.hbm %s2356_s1, 2048  ;;  %p2007_p8 = pneg %p1991_p6 }
  0x16   : > { %p1676_p7 = scmp.ne.s32.totalorder %s2356_s1, %s1675_s24  ;;  %p1682_p11 = scmp.lt.u32.totalorder %s1675_s24, %s2356_s1 }
  0x18   : > { %p1678_p9 = pnand %p2007_p8, %p1676_p7 }
  0x1a   : > { %p1679_p10 = pneg %p1678_p9 }
  0x1c   : > { %p1684_p12 = pnand %p1682_p11, %p1679_p10 }
  0x1e   : > { %1687 = shalt.err (!%p1684_p12)
}
  0x1f   : > { %s1688_s13 = scalar_lea.vmem %s1980_s14, 2048  ;;  %p1696_p5 = scmp.lt.s32.totalorder %s1980_s14, %s1980_s14 }
  0x20   : > { %p1689_p13 = scmp.ne.s32.totalorder %s1980_s14, %s1688_s13  ;;  %p1697_p4 = scmp.lt.s32.totalorder %s1688_s13, %s1688_s13 }
  0x22   : > { %p1691_p0 = pnand %p1689_p13, %p2007_p8  ;;  %p1698_p7 = por %p1697_p4, %p1696_p5 }
  0x24   : > { %p1692_p2 = pneg %p1691_p0 }
  0x26   : > { %p1699_p9 = pnand %p1698_p7, %p1692_p2 }
  0x28   : > { %1702 = shalt.err (!%p1699_p9)
}
  0x29   : > { %s1896_s17 = smov 128   ;;  %s1897_s20 = smov 8  }
  0x2a   : > { %1606 = dma.hbm_to_vmem [thread:$0]  (!%p1991_p6), %s2356_s1, 2048, %s1980_s14, [#allocation6], %s1896_s17, %s1896_s17, %s1897_s20  }
  0x2b   : > { %s1703_s26 = scalar_lea.hbm %s2343_s5, 4096 }
  0x2c   : > { %p1704_p4 = scmp.ne.s32.totalorder %s2343_s5, %s1703_s26  ;;  %p1710_p12 = scmp.lt.u32.totalorder %s1703_s26, %s2343_s5 }
  0x2e   : > { %p1706_p10 = pnand %p1704_p4, %p2007_p8 }
  0x30   : > { %p1707_p11 = pneg %p1706_p10 }
  0x32   : > { %p1712_p13 = pnand %p1710_p12, %p1707_p11 }
  0x34   : > { %1715 = shalt.err (!%p1712_p13)
}
  0x35   : > { %s1716_s14 = scalar_lea.vmem %s1995_s18, 4096  ;;  %p1724_p7 = scmp.lt.s32.totalorder %s1995_s18, %s1995_s18 }
  0x36   : > { %p1717_p0 = scmp.ne.s32.totalorder %s1995_s18, %s1716_s14  ;;  %p1725_p9 = scmp.lt.s32.totalorder %s1716_s14, %s1716_s14 }
  0x38   : > { %p1719_p2 = pnand %p1717_p0, %p2007_p8  ;;  %p1726_p4 = por %p1725_p9, %p1724_p7 }
  0x3a   : > { %p1720_p5 = pneg %p1719_p2 }
  0x3c   : > { %p1727_p10 = pnand %p1726_p4, %p1720_p5 }
  0x3e   : > { %1730 = shalt.err (!%p1727_p10)
}
  0x3f   : > { %1612 = dma.hbm_to_vmem [thread:$0]  (!%p1991_p6), %s2343_s5, 4096, %s1995_s18, [#allocation9], %s1896_s17, %s1896_s17, %s1897_s20  }
  0x40   : > { %s1731_s25 = scalar_lea.hbm %s2341_s3, 4096 }
  0x41   : > { %p1732_p11 = scmp.ne.s32.totalorder %s2341_s3, %s1731_s25  ;;  %p1738_p0 = scmp.lt.u32.totalorder %s1731_s25, %s2341_s3 }
  0x43   : > { %p1734_p12 = pnand %p1732_p11, %p2007_p8 }
  0x45   : > { %p1735_p13 = pneg %p1734_p12 }
  0x47   : > { %p1740_p2 = pnand %p1738_p0, %p1735_p13 }
  0x49   : > { %1743 = shalt.err (!%p1740_p2)
}
  0x4a   : > { %s1744_s18 = scalar_lea.vmem %s1997_s21, 4096  ;;  %p1752_p4 = scmp.lt.s32.totalorder %s1997_s21, %s1997_s21 }
  0x4b   : > { %p1745_p5 = scmp.ne.s32.totalorder %s1997_s21, %s1744_s18  ;;  %p1753_p10 = scmp.lt.s32.totalorder %s1744_s18, %s1744_s18 }
  0x4d   : > { %p1747_p7 = pnand %p1745_p5, %p2007_p8  ;;  %p1754_p11 = por %p1753_p10, %p1752_p4 }
  0x4f   : > { %p1748_p9 = pneg %p1747_p7 }
  0x51   : > { %p1755_p12 = pnand %p1754_p11, %p1748_p9 }
  0x53   : > { %1758 = shalt.err (!%p1755_p12)
}
  0x54   : > { %1609 = dma.hbm_to_vmem [thread:$0]  (!%p1991_p6), %s2341_s3, 4096, %s1997_s21, [#allocation6], %s1896_s17, %s1896_s17, %s1897_s20  }
  0x55   : > { %s1898_s22 = smov [#allocation10]   ;;  %s1759_s26 = scalar_lea.hbm %s2345_s7, 2048 }
  0x56   : > { %s312_s23 = sshll.u32 %s1898_s22, 4  ;;  %p1760_p13 = scmp.ne.s32.totalorder %s2345_s7, %s1759_s26  ;;  %s313_s23 = int_to_ptr.vmem [resolvable:$true] %s312_s23 }
  0x57   : > { %p1766_p5 = scmp.lt.u32.totalorder %s1759_s26, %s2345_s7 }
  0x58   : > { %p1762_p0 = pnand %p1760_p13, %p2007_p8 }
  0x5a   : > { %p1763_p2 = pneg %p1762_p0 }
  0x5c   : > { %p1768_p7 = pnand %p1766_p5, %p1763_p2 }
  0x5e   : > { %1771 = shalt.err (!%p1768_p7)
}
  0x5f   : > { %s1772_s21 = scalar_lea.vmem %s313_s23, 2048  ;;  %p1780_p11 = scmp.lt.s32.totalorder %s313_s23, %s313_s23 }
  0x60   : > { %p1773_p9 = scmp.ne.s32.totalorder %s313_s23, %s1772_s21  ;;  %p1781_p12 = scmp.lt.s32.totalorder %s1772_s21, %s1772_s21 }
  0x62   : > { %p1775_p4 = pnand %p1773_p9, %p2007_p8  ;;  %p1782_p1 = por %p1781_p12, %p1780_p11 }
  0x64   : > { %p1776_p10 = pneg %p1775_p4 }
  0x66   : > { %p1783_p3 = pnand %p1782_p1, %p1776_p10 }
  0x68   : > { %1786 = shalt.err (!%p1783_p3)
}
  0x69   : > { %1615 = dma.hbm_to_vmem [thread:$0]  (!%p1991_p6), %s2345_s7, 2048, %s313_s23, [#allocation9], %s1896_s17, %s1896_s17, %s1897_s20  }
  0x6a   : > { %s1099_s19 = sadd.s32 4294967294, %s1891_s12   ;;  %s2106_s27 = sadd.s32 1, %s1891_s12  }
  0x6b   : > { %s31_s22 = ssub.s32 %s1891_s12, %s2106_s27  ;;  %s34_s24 = sadd.s32 1, %s1887_s11 }
  0x6c   : > { %p32_p1 = scmp.eq.s32.totalorder %s31_s22, 0  ;;  %p41_p3 = scmp.ne.s32.totalorder %s1887_s11, %s1883_s10 }
  0x6d   : > { %p42_p8 = scmp.eq.s32.totalorder %s1891_s12, 0  ;;  %p47_p13 = scmp.ne.s32.totalorder %s1883_s10, %s1879_s30 }
  0x6e   : > { %s2117_s25 = scalar_select %p32_p1, %s1887_s11, %s34_s24  }
  0x6f   : > { %p2119_p0 = por %p42_p8, %p41_p3  ;;  %p2359_p2 = scmp.eq.s32.totalorder %s1975_s15, 0 }
  0x70   : > { %p239_p5 = scmp.eq.s32.totalorder %s1975_s15, 1  ;;  %p245_p7 = scmp.eq.s32.totalorder %s1099_s19, 1 }
  0x71   : > { %p2125_p6 = por %p2359_p2, %p47_p13  ;;  %p1628_p9 = scmp.lt.s32.totalorder %s1891_s12, 2 }
  0x72   : > { %s329_s20 = sand.u32 1, %s1887_s11   ;;  %p2132_p4 = por %p239_p5, %p41_p3 }
  0x73   : > { %p2136_p10 = por %p245_p7, %p47_p13  ;;  %s1106_s29 = sshll.u32 %s329_s20, 3 }
  0x74   : > { %s2361_s23 = scalar_select %p2132_p4, 1, 0 }
  0x75   : > { %s2362_s28 = scalar_select %p2136_p10, 1, 0 }
  0x76   : > { %s1107_s13 = sshll.u32 %s1891_s12, 7  ;;  %s333_s9 = scalar_lea.vmem [#allocation2], %s1106_s29 }
  0x77   : > { %s2144_s14 = scalar_lea.hbm %s2338_s0, %s1107_s13  ;;  %s340_s19 = sshll.u32 %s333_s9, 4  ;;  %s2146_s19 = int_to_ptr.vmem [resolvable:$true] %s340_s19 }
  0x78   : > { %p2150_p11 = pnand %p1628_p9, %p2119_p0  ;;  %s330_s24 = scalar_lea.sflag [#allocation3], %s329_s20 }
  0x79   : > { %s1787_s1 = scalar_lea.hbm %s2144_s14, 128  ;;  %s1792_s18 = scalar_lea.hbm %s2338_s0, 256 }
  0x7a   : > { %p1788_p12 = scmp.ne.s32.totalorder %s2144_s14, %s1787_s1  ;;  %p1789_p1 = pneg %p2150_p11 }
  0x7b   : > { %p1793_p13 = scmp.lt.u32.totalorder %s2144_s14, %s2338_s0  ;;  %p1794_p0 = scmp.lt.u32.totalorder %s1792_s18, %s1787_s1 }
  0x7c   : > { %p1790_p3 = pnand %p1789_p1, %p1788_p12  ;;  %p1796_p5 = scmp.lt.u32.totalorder %s1787_s1, %s2144_s14 }
  0x7d   : > { %p1795_p2 = por %p1794_p0, %p1793_p13 }
  0x7e   : > { %p1791_p8 = pneg %p1790_p3 }
  0x7f   : > { %p1797_p7 = por %p1796_p5, %p1795_p2 }
  0x81   : > { %p1798_p9 = pnand %p1797_p7, %p1791_p8 }
  0x83   : > { %1801 = shalt.err (!%p1798_p9)
}
  0x84   : > { %s1802_s20 = scalar_lea.vmem %s2146_s19, 128  ;;  %s1899_s9 = smov [#allocation2]  }
  0x85   : > { %p1803_p12 = scmp.ne.s32.totalorder %s2146_s19, %s1802_s20  ;;  %s1807_s29 = sshll.u32 %s1899_s9, 4  ;;  %s1808_s29 = int_to_ptr.vmem [resolvable:$false] %s1807_s29 }
  0x86   : > { %s1809_s13 = scalar_lea.vmem %s1808_s29, 256  ;;  %p1810_p4 = scmp.lt.s32.totalorder %s2146_s19, %s1808_s29 }
  0x87   : > { %p1805_p3 = pnand %p1803_p12, %p1789_p1  ;;  %p1811_p13 = scmp.lt.s32.totalorder %s1809_s13, %s1802_s20 }
  0x89   : > { %p1806_p10 = pneg %p1805_p3  ;;  %p1812_p0 = por %p1811_p13, %p1810_p4 }
  0x8b   : > { %p1813_p2 = pnand %p1812_p0, %p1806_p10 }
  0x8d   : > { %1816 = shalt.err (!%p1813_p2)
}
  0x8e   : > { %1619 = dma.hbm_to_vmem [thread:$0]  (!%p2150_p11), %s2144_s14, 128, %s2146_s19, %s330_s24  }
  0x8f   : > { %p2364_p8 = scmp.ne.s32.totalorder %s2354_s16, 0 }
  0x90   : > { %s2182_s1 = sand.u32 (!%p2364_p8), 1, %s1883_s10  }
  0x91   : > { %349 = sbr.rel (%p2364_p8) target bundleno = 1505 (0x5e1), region = 56  ;;  %s1109_s18 = sshll.u32 (!%p2364_p8), %s2182_s1, 3 }
  0x92   : > { %s352_s26 = scalar_lea.sflag (!%p2364_p8), [#allocation3], %s2182_s1  ;;  %s2188_s21 = scalar_lea.vmem (!%p2364_p8), [#allocation2], %s1109_s18 }
  0x98   : > { %1862 = dma.done.wait (%p2125_p6), %s352_s26, 128  }
  0x99   : > { %1864 = vsyncadd (%p2125_p6), %s352_s26, 4294967168  ;;  %p2365_p4 = scmp.eq.s32.totalorder %s1975_s15, 0 }
  0x9b   : > { %1866 = dma.done.wait (%p2365_p4), [#allocation6], 6144   ;;  %p2366_p10 = pmov %p2365_p4 }
  0x9c   : > { %p2367_p11 = pmov %p2365_p4 }
  0x9d   : > { %1868 = vsyncadd (%p2366_p10), [#allocation6], 4294961152 }
  0x9e   : > { %1870 = dma.done.wait (%p2367_p11), [#allocation9], 6144   ;;  %p2368_p1 = pmov %p2365_p4 }
  0x9f   : > { %v1900_v0 = vmov 0.0|0.0   ;;  %vm1901_vm0 = vmmov 0   ;;  %v1902_v1 = vmov 0.0   ;;  %v407_v2 = vld [vmem:[#allocation5] sm:$0xff]  ;;  %v408_v3 = vld [vmem:[#allocation5 + $0x8] sm:$0xff]  ;;  %v409_v4 = vld [vmem:[#allocation5 + $0x10] sm:$0xff] }
  0xa0   : > { %1872 = vsyncadd (%p2368_p1), [#allocation9], 4294961152  ;;  %1439 = vmatprep.subr.bf16.mxu0 %v1900_v0  ;;  %1261 = vmatprep.mubr.msk.f32.mxu0 %vm1901_vm0, %v1902_v1  ;;  %v1440_v5 = vpack.c.bf16 %v408_v3, %v407_v2  ;;  %v410_v6 = vld [vmem:[#allocation5 + $0x18] sm:$0xff]  ;;  %v411_v8 = vld [vmem:[#allocation5 + $0x20] sm:$0xff]  ;;  %s1124_s16 = sshll.u32 %s1975_s15, 7  ;;  %s405_s17 = scalar_lea.vmem [#allocation11], %s1109_s18 }
  0xa1   : > { %1463 = vmatprep.subr.bf16.mxu1 %v1900_v0  ;;  %1296 = vmatprep.mubr.msk.f32.mxu1 %vm1901_vm0, %v1902_v1  ;;  %v1443_v7 = vpack.c.bf16 %v410_v6, %v409_v4  ;;  %v412_v9 = vld [vmem:[#allocation5 + $0x28] sm:$0xff]  ;;  %v501_v10 = vld [vmem:[#allocation7] sm:$0xff]  ;;  %v503_v12 = vld [vmem:[#allocation7 + $0x10] sm:$0xff]  ;;  %s991_s14 = sshll.u32 %s405_s17, 4  ;;  %s2369_s24 = sld [smem:[#allocation17_spill]]  ;;  %s2296_s14 = int_to_ptr.vmem [resolvable:$true] %s991_s14 }
  0xa2   : > { %1441 = vmatpush3.bf16.msra.mxu0 %v1440_v5  ;;  %v502_v11 = vld [vmem:[#allocation7 + $0x8] sm:$0xff]  ;;  %v504_v13 = vld [vmem:[#allocation7 + $0x18] sm:$0xff]  ;;  %v1446_v14 = vpack.c.bf16 %v412_v9, %v411_v8  ;;  %v413_v16 = vld [vmem:[#allocation5 + $0x30] sm:$0xff]  ;;  %s978_s9 = scalar_lea.sflag [#allocation4], %s2182_s1  ;;  %s1817_s29 = scalar_lea.vmem %s2296_s14, 128 }
  0xa3   : > { %1442 = vmatprep.subr.bf16.mxu0 %v1900_v0  ;;  %v1464_v15 = vpack.c.bf16 %v502_v11, %v501_v10  ;;  %v414_v17 = vld [vmem:[#allocation5 + $0x38] sm:$0xff]  ;;  %v1467_v18 = vpack.c.bf16 %v504_v13, %v503_v12  ;;  %v505_v19 = vld [vmem:[#allocation7 + $0x20] sm:$0xff]  ;;  %v506_v20 = vld [vmem:[#allocation7 + $0x28] sm:$0xff]  ;;  %p1818_p6 = scmp.ne.s32.totalorder %s2296_s14, %s1817_s29  ;;  %p2370_p5 = scmp.ne.s32.totalorder %s2361_s23, 0 }
  0xa4   : > { %v1449_v21 = vpack.c.bf16 %v414_v17, %v413_v16  ;;  %v415_v22 = vld [vmem:[#allocation5 + $0x40] sm:$0xff]  ;;  %v416_v23 = vld [vmem:[#allocation5 + $0x48] sm:$0xff]  ;;  %v1470_v24 = vpack.c.bf16 %v506_v20, %v505_v19  ;;  %v507_v25 = vld [vmem:[#allocation7 + $0x30] sm:$0xff]  ;;  %s1903_s15 = smov [#allocation11]  }
  0xa5   : > { %1465 = vmatpush3.bf16.msra.mxu1 %v1464_v15  ;;  %v508_v26 = vld [vmem:[#allocation7 + $0x38] sm:$0xff]  ;;  %v1452_v27 = vpack.c.bf16 %v416_v23, %v415_v22  ;;  %v417_v28 = vld [vmem:[#allocation5 + $0x50] sm:$0xff]  ;;  %v509_v31 = vld [vmem:[#allocation7 + $0x40] sm:$0xff]  ;;  %p1819_p7 = pnand %p1818_p6, %p2370_p5  ;;  %s1821_s18 = sshll.u32 %s1903_s15, 4  ;;  %s1822_s18 = int_to_ptr.vmem [resolvable:$false] %s1821_s18 }
  0xa6   : > { %1444 = vmatpush3.bf16.msra.mxu0 %v1443_v7  ;;  %1466 = vmatprep.subr.bf16.mxu1 %v1900_v0  ;;  %v418_v29 = vld [vmem:[#allocation5 + $0x58] sm:$0xff]  ;;  %v1473_v30 = vpack.c.bf16 %v508_v26, %v507_v25  ;;  %v510_v32 = vld [vmem:[#allocation7 + $0x48] sm:$0xff]  ;;  %v419_v34 = vld [vmem:[#allocation5 + $0x60] sm:$0xff]  ;;  %s1823_s13 = scalar_lea.vmem %s1822_s18, 256  ;;  %p1824_p12 = scmp.lt.s32.totalorder %s2296_s14, %s1822_s18 }
  0xa7   : > { %1445 = vmatprep.subr.bf16.mxu0 %v1900_v0  ;;  %v1455_v33 = vpack.c.bf16 %v418_v29, %v417_v28  ;;  %v420_v35 = vld [vmem:[#allocation5 + $0x68] sm:$0xff]  ;;  %v1476_v36 = vpack.c.bf16 %v510_v32, %v509_v31  ;;  %v511_v37 = vld [vmem:[#allocation7 + $0x50] sm:$0xff]  ;;  %v512_v38 = vld [vmem:[#allocation7 + $0x58] sm:$0xff]  ;;  %s2294_s20 = scalar_lea.hbm %s2369_s24, %s1124_s16  ;;  %p1820_p9 = pneg %p1819_p7 }
  0xa8   : > { %v1458_v39 = vpack.c.bf16 %v420_v35, %v419_v34  ;;  %v421_v40 = vld [vmem:[#allocation5 + $0x70] sm:$0xff]  ;;  %v422_v41 = vld [vmem:[#allocation5 + $0x78] sm:$0xff]  ;;  %v1479_v42 = vpack.c.bf16 %v512_v38, %v511_v37  ;;  %v513_v43 = vld [vmem:[#allocation7 + $0x60] sm:$0xff]  ;;  %p1825_p3 = scmp.lt.s32.totalorder %s1823_s13, %s1817_s29 }
  0xa9   : > { %1468 = vmatpush3.bf16.msra.mxu1 %v1467_v18  ;;  %v514_v44 = vld [vmem:[#allocation7 + $0x68] sm:$0xff]  ;;  %v1461_v45 = vpack.c.bf16 %v422_v41, %v421_v40  ;;  %v406_v47 = vld [vmem:[%s2188_s21] sm:$0xff]  ;;  %v595_v51 = vld [vmem:[#allocation8] sm:$0xff] }
  0xaa   : > { %1447 = vmatpush3.bf16.msra.mxu0 %v1446_v14  ;;  %1469 = vmatprep.subr.bf16.mxu1 %v1900_v0  ;;  %v1482_v46 = vpack.c.bf16 %v514_v44, %v513_v43  ;;  %v515_v48 = vld [vmem:[#allocation7 + $0x70] sm:$0xff]  ;;  %v516_v49 = vld [vmem:[#allocation7 + $0x78] sm:$0xff]  ;;  %v596_v52 = vld [vmem:[#allocation8 + $0x8] sm:$0xff]  ;;  %p1826_p13 = por %p1825_p3, %p1824_p12 }
  0xab   : > { %1448 = vmatprep.subr.bf16.mxu0 %v1900_v0  ;;  %v1485_v50 = vpack.c.bf16 %v516_v49, %v515_v48  ;;  %v597_v53 = vld [vmem:[#allocation8 + $0x10] sm:$0xff]  ;;  %v1488_v54 = vpack.c.bf16 %v596_v52, %v595_v51  ;;  %v598_v55 = vld [vmem:[#allocation8 + $0x18] sm:$0xff]  ;;  %v599_v57 = vld [vmem:[#allocation8 + $0x20] sm:$0xff] }
  0xac   : > { %v1491_v56 = vpack.c.bf16 %v598_v55, %v597_v53  ;;  %v600_v58 = vld [vmem:[#allocation8 + $0x28] sm:$0xff]  ;;  %v601_v60 = vld [vmem:[#allocation8 + $0x30] sm:$0xff]  ;;  %v602_v61 = vld [vmem:[#allocation8 + $0x38] sm:$0xff]  ;;  %p1827_p0 = pnand %p1826_p13, %p1820_p9 }
  0xad   : > { %1471 = vmatpush3.bf16.msra.mxu1 %v1470_v24  ;;  %v1494_v59 = vpack.c.bf16 %v600_v58, %v599_v57  ;;  %v1497_v62 = vpack.c.bf16 %v602_v61, %v601_v60  ;;  %v603_v63 = vld [vmem:[#allocation8 + $0x40] sm:$0xff]  ;;  %v604_v2 = vld [vmem:[#allocation8 + $0x48] sm:$0xff]  ;;  %v605_v4 = vld [vmem:[#allocation8 + $0x50] sm:$0xff] }
  0xae   : > { %1450 = vmatpush3.bf16.msra.mxu0 %v1449_v21  ;;  %1472 = vmatprep.subr.bf16.mxu1 %v1900_v0  ;;  %v1500_v3 = vpack.c.bf16 %v604_v2, %v603_v63  ;;  %v606_v5 = vld [vmem:[#allocation8 + $0x58] sm:$0xff]  ;;  %v607_v7 = vld [vmem:[#allocation8 + $0x60] sm:$0xff]  ;;  %v608_v8 = vld [vmem:[#allocation8 + $0x68] sm:$0xff] }
  0xaf   : > { %1451 = vmatprep.subr.bf16.mxu0 %v1900_v0  ;;  %v1503_v6 = vpack.c.bf16 %v606_v5, %v605_v4  ;;  %v1506_v9 = vpack.c.bf16 %v608_v8, %v607_v7  ;;  %v1115_v10 = vld [vmem:[%s2340_s2] ss:$0 sm:$0xff]  ;;  %v610_v16 = vld [vmem:[#allocation8 + $0x78] sm:$0xff]  ;;  %v691_v18 = vld [vmem:[#allocation7 + $0x80] sm:$0xff] }
  0xb0   : > { %v609_v15 = vld [vmem:[#allocation8 + $0x70] sm:$0xff]  ;;  %v692_v19 = vld [vmem:[#allocation7 + $0x88] sm:$0xff]  ;;  %v694_v22 = vld [vmem:[#allocation7 + $0x98] sm:$0xff] }
  0xb1   : > { %1474 = vmatpush3.bf16.msra.mxu1 %v1473_v30  ;;  %v1509_v17 = vpack.c.bf16 %v610_v16, %v609_v15  ;;  %v693_v20 = vld [vmem:[#allocation7 + $0x90] sm:$0xff]  ;;  %v1512_v21 = vpack.c.bf16 %v692_v19, %v691_v18  ;;  %v695_v24 = vld [vmem:[#allocation7 + $0xa0] sm:$0xff]  ;;  %v696_v25 = vld [vmem:[#allocation7 + $0xa8] sm:$0xff] }
  0xb2   : > { %1453 = vmatpush3.bf16.msra.mxu0 %v1452_v27  ;;  %1475 = vmatprep.subr.bf16.mxu1 %v1900_v0  ;;  %v1515_v23 = vpack.c.bf16 %v694_v22, %v693_v20  ;;  %v1518_v26 = vpack.c.bf16 %v696_v25, %v695_v24  ;;  %v697_v27 = vld [vmem:[#allocation7 + $0xb0] sm:$0xff]  ;;  %v698_v28 = vld [vmem:[#allocation7 + $0xb8] sm:$0xff]  ;;  %v699_v30 = vld [vmem:[#allocation7 + $0xc0] sm:$0xff] }
  0xb3   : > { %1454 = vmatprep.subr.bf16.mxu0 %v1900_v0  ;;  %v1521_v29 = vpack.c.bf16 %v698_v28, %v697_v27  ;;  %v700_v31 = vld [vmem:[#allocation7 + $0xc8] sm:$0xff]  ;;  %v702_v34 = vld [vmem:[#allocation7 + $0xd8] sm:$0xff]  ;;  %v703_v41 = vld [vmem:[#allocation7 + $0xe0] sm:$0xff] }
  0xb4   : > { %v1524_v32 = vpack.c.bf16 %v700_v31, %v699_v30  ;;  %v705_v44 = vld [vmem:[#allocation7 + $0xf0] sm:$0xff]  ;;  %v788_v48 = vld [vmem:[#allocation8 + $0x88] sm:$0xff]  ;;  %v790_v51 = vld [vmem:[#allocation8 + $0x98] sm:$0xff] }
  0xb5   : > { %1477 = vmatpush3.bf16.msra.mxu1 %v1476_v36  ;;  %v1116_v36 = vld [vmem:[%s2342_s4] ss:$0 sm:$0xff]  ;;  %v791_v53 = vld [vmem:[#allocation8 + $0xa0] sm:$0xff]  ;;  %v794_v57 = vld [vmem:[#allocation8 + $0xb8] sm:$0xff] }
  0xb6   : > { %1456 = vmatpush3.bf16.msra.mxu0 %v1455_v33  ;;  %1478 = vmatprep.subr.bf16.mxu1 %v1900_v0  ;;  %v701_v33 = vld [vmem:[#allocation7 + $0xd0] sm:$0xff]  ;;  %v796_v60 = vld [vmem:[#allocation8 + $0xc8] sm:$0xff]  ;;  %v798_v63 = vld [vmem:[#allocation8 + $0xd8] sm:$0xff] }
  0xb7   : > { %1457 = vmatprep.subr.bf16.mxu0 %v1900_v0  ;;  %v1527_v35 = vpack.c.bf16 %v702_v34, %v701_v33  ;;  %v789_v49 = vld [vmem:[#allocation8 + $0x90] sm:$0xff]  ;;  %v800_v4 = vld [vmem:[#allocation8 + $0xe8] sm:$0xff]  ;;  %v802_v15 = vld [vmem:[#allocation8 + $0xf8] sm:$0xff] }
  0xb8   : > { %v1539_v52 = vpack.c.bf16 %v790_v51, %v789_v49  ;;  %v884_v18 = vld [vmem:[#allocation10 + $0x8] sm:$0xff]  ;;  %v885_v19 = vld [vmem:[#allocation10 + $0x10] sm:$0xff]  ;;  %v890_v24 = vld [vmem:[#allocation10 + $0x38] sm:$0xff] }
  0xb9   : > { %1480 = vmatpush3.bf16.msra.mxu1 %v1479_v42  ;;  %v704_v42 = vld [vmem:[#allocation7 + $0xe8] sm:$0xff]  ;;  %v894_v30 = vld [vmem:[#allocation10 + $0x58] sm:$0xff] }
  0xba   : > { %1459 = vmatpush3.bf16.msra.mxu0 %v1458_v39  ;;  %1481 = vmatprep.subr.bf16.mxu1 %v1900_v0  ;;  %v1530_v43 = vpack.c.bf16 %v704_v42, %v703_v41  ;;  %v892_v27 = vld [vmem:[#allocation10 + $0x48] sm:$0xff]  ;;  %v898_v41 = vld [vmem:[#allocation10 + $0x78] sm:$0xff] }
  0xbb   : > { %1460 = vmatprep.subr.bf16.mxu0 %v1900_v0 }
  0xbd   : > { %1483 = vmatpush3.bf16.msra.mxu1 %v1482_v46 }
  0xbe   : > { %1462 = vmatpush3.bf16.msra.mxu0 %v1461_v45  ;;  %1484 = vmatprep.subr.bf16.mxu1 %v1900_v0  ;;  %v706_v45 = vld [vmem:[#allocation7 + $0xf8] sm:$0xff] }
  0xbf   : > { %1487 = vmatprep.subr.bf16.mxu0 %v1900_v0  ;;  %v1533_v46 = vpack.c.bf16 %v706_v45, %v705_v44 }
  0xc1   : > { %1262 = vmatmul.mubr.f32.vlgmr.msra.gmra.mrb[0].mxu0 %v406_v47  ;;  %1486 = vmatpush3.bf16.msra.mxu1 %v1485_v50  ;;  %v787_v47 = vld [vmem:[#allocation8 + $0x80] sm:$0xff] }
  0xc2   : > { %1331 = vmatprep.mubr.msk.f32.mxu0 %vm1901_vm0, %v1902_v1  ;;  %1511 = vmatprep.subr.bf16.mxu1 %v1900_v0  ;;  %v1536_v50 = vpack.c.bf16 %v788_v48, %v787_v47 }
  0xc3   : > { %1489 = vmatpush3.bf16.msra.mxu0 %v1488_v54  ;;  %v792_v54 = vld [vmem:[#allocation8 + $0xa8] sm:$0xff] }
  0xc4   : > { %1490 = vmatprep.subr.bf16.mxu0 %v1900_v0  ;;  %v1542_v55 = vpack.c.bf16 %v792_v54, %v791_v53 }
  0xc7   : > { %1492 = vmatpush3.bf16.msra.mxu0 %v1491_v56  ;;  %v793_v56 = vld [vmem:[#allocation8 + $0xb0] sm:$0xff] }
  0xc8   : > { %1493 = vmatprep.subr.bf16.mxu0 %v1900_v0  ;;  %v1545_v58 = vpack.c.bf16 %v794_v57, %v793_v56 }
  0xcb   : > { %1495 = vmatpush3.bf16.msra.mxu0 %v1494_v59  ;;  %v795_v59 = vld [vmem:[#allocation8 + $0xc0] sm:$0xff] }
  0xcc   : > { %1496 = vmatprep.subr.bf16.mxu0 %v1900_v0  ;;  %v1548_v61 = vpack.c.bf16 %v796_v60, %v795_v59 }
  0xcf   : > { %1498 = vmatpush3.bf16.msra.mxu0 %v1497_v62  ;;  %v797_v62 = vld [vmem:[#allocation8 + $0xd0] sm:$0xff] }
  0xd0   : > { %1499 = vmatprep.subr.bf16.mxu0 %v1900_v0  ;;  %v1551_v2 = vpack.c.bf16 %v798_v63, %v797_v62 }
  0xd3   : > { %1501 = vmatpush3.bf16.msra.mxu0 %v1500_v3  ;;  %v799_v3 = vld [vmem:[#allocation8 + $0xe0] sm:$0xff] }
  0xd4   : > { %1502 = vmatprep.subr.bf16.mxu0 %v1900_v0  ;;  %v1554_v5 = vpack.c.bf16 %v800_v4, %v799_v3 }
  0xd7   : > { %1504 = vmatpush3.bf16.msra.mxu0 %v1503_v6  ;;  %v1117_v6 = vld [vmem:[%s2344_s6] ss:$0 sm:$0xff] }
  0xd8   : > { %1505 = vmatprep.subr.bf16.mxu0 %v1900_v0 }
  0xdb   : > { %1507 = vmatpush3.bf16.msra.mxu0 %v1506_v9 }
  0xdc   : > { %1508 = vmatprep.subr.bf16.mxu0 %v1900_v0 }
  0xdf   : > { %1510 = vmatpush3.bf16.msra.mxu0 %v1509_v17  ;;  %v883_v17 = vld [vmem:[#allocation10] sm:$0xff] }
  0xe0   : > { %1535 = vmatprep.subr.bf16.mxu0 %v1900_v0  ;;  %v1560_v20 = vpack.c.bf16 %v884_v18, %v883_v17 }
 0x194   : > { %v496_v11 = vpop.f32.mrb[0].mxu0 }
 0x195   : > { %v2237_v12 = vadd.f32 %v1115_v10, %v496_v11  ;;  %v1263_v13 = vpop.f32.mrb[1].mxu0 }
 0x196   : > { %v801_v13 = vld [vmem:[#allocation8 + $0xf0] sm:$0xff] }
 0x197   : > { %v500_v14 = vmax.f32 %v2237_v12, 0.0  ;;  %v1557_v16 = vpack.c.bf16 %v802_v15, %v801_v13  ;;  %v887_v12 = vld [vmem:[#allocation10 + $0x20] sm:$0xff] }
 0x199   : > { %1297 = vmatmul.mubr.f32.vlgmr.msra.gmra.mrb[0].mxu1 %v500_v14 }
 0x19a   : > { %1366 = vmatprep.mubr.msk.f32.mxu1 %vm1901_vm0, %v1902_v1  ;;  %1513 = vmatpush3.bf16.msra.mxu1 %v1512_v21  ;;  %v886_v21 = vld [vmem:[#allocation10 + $0x18] sm:$0xff] }
 0x19b   : > { %1514 = vmatprep.subr.bf16.mxu1 %v1900_v0  ;;  %v1563_v22 = vpack.c.bf16 %v886_v21, %v885_v19 }
 0x19e   : > { %1516 = vmatpush3.bf16.msra.mxu1 %v1515_v23 }
 0x19f   : > { %1517 = vmatprep.subr.bf16.mxu1 %v1900_v0 }
 0x1a2   : > { %1519 = vmatpush3.bf16.msra.mxu1 %v1518_v26  ;;  %v891_v26 = vld [vmem:[#allocation10 + $0x40] sm:$0xff] }
 0x1a3   : > { %1520 = vmatprep.subr.bf16.mxu1 %v1900_v0  ;;  %v1572_v28 = vpack.c.bf16 %v892_v27, %v891_v26 }
 0x1a6   : > { %1522 = vmatpush3.bf16.msra.mxu1 %v1521_v29  ;;  %v893_v29 = vld [vmem:[#allocation10 + $0x50] sm:$0xff] }
 0x1a7   : > { %1523 = vmatprep.subr.bf16.mxu1 %v1900_v0  ;;  %v1575_v31 = vpack.c.bf16 %v894_v30, %v893_v29 }
 0x1aa   : > { %1525 = vmatpush3.bf16.msra.mxu1 %v1524_v32  ;;  %v1119_v32 = vld [vmem:[%s2342_s4 + $0x1] ss:$0 sm:$0xff] }
 0x1ab   : > { %1526 = vmatprep.subr.bf16.mxu1 %v1900_v0 }
 0x1ae   : > { %1528 = vmatpush3.bf16.msra.mxu1 %v1527_v35 }
 0x1af   : > { %1529 = vmatprep.subr.bf16.mxu1 %v1900_v0 }
 0x1b2   : > { %1531 = vmatpush3.bf16.msra.mxu1 %v1530_v43  ;;  %v1121_v43 = vld [vmem:[%s2344_s6 + $0x1] ss:$0 sm:$0xff] }
 0x1b3   : > { %1532 = vmatprep.subr.bf16.mxu1 %v1900_v0 }
 0x1b6   : > { %1534 = vmatpush3.bf16.msra.mxu1 %v1533_v46 }
 0x1b7   : > { %1559 = vmatprep.subr.bf16.mxu1 %v1900_v0 }
 0x26c   : > { %v590_v37 = vpop.f32.mrb[0].mxu1 }
 0x26d   : > { %v591_v38 = vadd.f32 %v1116_v36, %v590_v37  ;;  %v1298_v39 = vpop.f32.mrb[1].mxu1  ;;  %v895_v37 = vld [vmem:[#allocation10 + $0x60] sm:$0xff] }
 0x26f   : > { %v594_v40 = vmax.f32 %v591_v38, 0.0  ;;  %v896_v38 = vld [vmem:[#allocation10 + $0x68] sm:$0xff] }
 0x270   : > { %v1578_v39 = vpack.c.bf16 %v896_v38, %v895_v37 }
 0x271   : > { %1332 = vmatmul.mubr.f32.vlgmr.msra.gmra.mrb[2].mxu0 %v594_v40  ;;  %v897_v40 = vld [vmem:[#allocation10 + $0x70] sm:$0xff] }
 0x272   : > { %1401 = vmatprep.mubr.msk.f32.mxu0 %vm1901_vm0, %v1902_v1  ;;  %1537 = vmatpush3.bf16.msra.mxu0 %v1536_v50  ;;  %v1581_v42 = vpack.c.bf16 %v898_v41, %v897_v40 }
 0x273   : > { %1538 = vmatprep.subr.bf16.mxu0 %v1900_v0 }
 0x276   : > { %1540 = vmatpush3.bf16.msra.mxu0 %v1539_v52 }
 0x277   : > { %1541 = vmatprep.subr.bf16.mxu0 %v1900_v0 }
 0x27a   : > { %1543 = vmatpush3.bf16.msra.mxu0 %v1542_v55 }
 0x27b   : > { %1544 = vmatprep.subr.bf16.mxu0 %v1900_v0 }
 0x27e   : > { %1546 = vmatpush3.bf16.msra.mxu0 %v1545_v58 }
 0x27f   : > { %1547 = vmatprep.subr.bf16.mxu0 %v1900_v0 }
 0x282   : > { %1549 = vmatpush3.bf16.msra.mxu0 %v1548_v61 }
 0x283   : > { %1550 = vmatprep.subr.bf16.mxu0 %v1900_v0 }
 0x286   : > { %1552 = vmatpush3.bf16.msra.mxu0 %v1551_v2 }
 0x287   : > { %1553 = vmatprep.subr.bf16.mxu0 %v1900_v0 }
 0x28a   : > { %1555 = vmatpush3.bf16.msra.mxu0 %v1554_v5 }
 0x28b   : > { %1556 = vmatprep.subr.bf16.mxu0 %v1900_v0 }
 0x28e   : > { %1558 = vmatpush3.bf16.msra.mxu0 %v1557_v16 }
 0x344   : > { %v684_v7 = vpop.f32.mrb[2].mxu0 }
 0x345   : > { %v685_v8 = vadd.f32 %v1117_v6, %v684_v7  ;;  %v1333_v9 = vpop.f32.mrb[3].mxu0 }
 0x347   : > { %v688_v10 = vadd.f32 %v685_v8, %v500_v14  ;;  %v888_v14 = vld [vmem:[#allocation10 + $0x28] sm:$0xff] }
 0x348   : > { %v1566_v23 = vpack.c.bf16 %v888_v14, %v887_v12 }
 0x349   : > { %v689_v11 = vmax.f32 %v688_v10, 0.0 }
 0x34b   : > { %1367 = vmatmul.mubr.f32.vlgmr.msra.gmra.mrb[2].mxu1 %v689_v11 }
 0x34c   : > { %1436 = vmatprep.mubr.msk.f32.mxu1 %vm1901_vm0, %v1902_v1  ;;  %1561 = vmatpush3.bf16.msra.mxu1 %v1560_v20  ;;  %v889_v1 = vld [vmem:[#allocation10 + $0x30] sm:$0xff] }
 0x34d   : > { %1562 = vmatprep.subr.bf16.mxu1 %v1900_v0  ;;  %v1569_v25 = vpack.c.bf16 %v890_v24, %v889_v1 }
 0x350   : > { %1564 = vmatpush3.bf16.msra.mxu1 %v1563_v22 }
 0x351   : > { %1565 = vmatprep.subr.bf16.mxu1 %v1900_v0 }
 0x354   : > { %1567 = vmatpush3.bf16.msra.mxu1 %v1566_v23 }
 0x355   : > { %1568 = vmatprep.subr.bf16.mxu1 %v1900_v0 }
 0x358   : > { %1570 = vmatpush3.bf16.msra.mxu1 %v1569_v25 }
 0x359   : > { %1571 = vmatprep.subr.bf16.mxu1 %v1900_v0 }
 0x35c   : > { %1573 = vmatpush3.bf16.msra.mxu1 %v1572_v28 }
 0x35d   : > { %1574 = vmatprep.subr.bf16.mxu1 %v1900_v0 }
 0x360   : > { %1576 = vmatpush3.bf16.msra.mxu1 %v1575_v31 }
 0x361   : > { %1577 = vmatprep.subr.bf16.mxu1 %v1900_v0 }
 0x364   : > { %1579 = vmatpush3.bf16.msra.mxu1 %v1578_v39 }
 0x365   : > { %1580 = vmatprep.subr.bf16.mxu1 %v1900_v0  ;;  %v1122_v0 = vld [vmem:[%s2346_s8] ss:$0 sm:$0xff] }
 0x368   : > { %1582 = vmatpush3.bf16.msra.mxu1 %v1581_v42 }
 0x41e   : > { %v781_v33 = vpop.f32.mrb[2].mxu1 }
 0x41f   : > { %v782_v34 = vadd.f32 %v1119_v32, %v781_v33  ;;  %v1368_v35 = vpop.f32.mrb[3].mxu1 }
 0x421   : > { %v785_v36 = vmax.f32 %v782_v34, 0.0 }
 0x423   : > { %1402 = vmatmul.mubr.f32.vlgmr.msra.gmra.mrb[4].mxu0 %v785_v36 }
 0x4f6   : > { %v877_v44 = vpop.f32.mrb[4].mxu0 }
 0x4f7   : > { %v878_v45 = vadd.f32 %v1121_v43, %v877_v44  ;;  %v1403_v46 = vpop.f32.mrb[5].mxu0 }
 0x4f9   : > { %v881_v47 = vadd.f32 %v878_v45, %v689_v11 }
 0x4fb   : > { %v882_v48 = vmax.f32 %v881_v47, 0.0 }
 0x4fd   : > { %1437 = vmatmul.mubr.f32.vlgmr.msra.gmra.mrb[4].mxu1 %v882_v48 }
 0x5d0   : > { %v972_v49 = vpop.f32.mrb[4].mxu1 }
 0x5d1   : > { %v973_v50 = vadd.f32 %v1122_v0, %v972_v49  ;;  %v1438_v51 = vpop.f32.mrb[5].mxu1 }
 0x5d3   : > { %976 = vst [vmem:[%s405_s17] sm:$0xff] %v973_v50 }
 0x5d4   : > { %1830 = shalt.err (!%p1827_p0)
}
 0x5d5   : > { %s1831_s1 = scalar_lea.hbm %s2294_s20, 128  ;;  %s1835_s16 = scalar_lea.hbm %s2369_s24, 256 }
 0x5d6   : > { %p1832_p2 = scmp.ne.s32.totalorder %s2294_s20, %s1831_s1  ;;  %p1836_p10 = scmp.lt.u32.totalorder %s2294_s20, %s2369_s24 }
 0x5d7   : > { %p1837_p11 = scmp.lt.u32.totalorder %s1835_s16, %s1831_s1  ;;  %p1839_p6 = scmp.lt.u32.totalorder %s1831_s1, %s2294_s20 }
 0x5d8   : > { %p1833_p8 = pnand %p1832_p2, %p2370_p5 }
 0x5d9   : > { %p1838_p1 = por %p1837_p11, %p1836_p10 }
 0x5da   : > { %p1834_p4 = pneg %p1833_p8 }
 0x5db   : > { %p1840_p7 = por %p1839_p6, %p1838_p1 }
 0x5dd   : > { %p1841_p9 = pnand %p1840_p7, %p1834_p4 }
 0x5df   : > { %1844 = shalt.err (!%p1841_p9)
}
 0x5e0   : > { %1601 = dma.vmem_to_hbm [thread:$0]  (%p2370_p5), %s2296_s14, 128, %s2294_s20, %s978_s9  }
 0x5e1 PF: > { %s1003_s22 = sand.u32 1, %s1879_s30   ;;  %p2371_p12 = scmp.ne.s32.totalorder %s2362_s28, 0 }
 0x5e2   : > { %p2372_p3 = scmp.ge.s32.totalorder %s1891_s12, 2  ;;  %s1004_s29 = scalar_lea.sflag [#allocation4], %s1003_s22 }
 0x5e4   : > { %p1621_p13 = pnand %p2372_p3, %p2371_p12 }
 0x5e6   : > { %1874 = dma.done.wait (!%p1621_p13), %s1004_s29, 128  }
 0x5e7   : > { %1876 = vsyncadd (!%p1621_p13), %s1004_s29, 4294967168  ;;  %p24_p0 = scmp.ge.s32.totalorder %s2106_s27, 4   ;;  %s2373_s30 = smov %s1883_s10 }
 0x5e8   : > { %s2374_s10 = smov %s1887_s11  ;;  %s2375_s11 = smov %s2117_s25 }
 0x5e9   : > { %s2376_s12 = smov %s2106_s27  ;;  %26 = sbr.rel (!%p24_p0) target bundleno = 10 (0xa), region = 121 }
 0x5f0   :  { %1009 = vsyncpa [#allocation3], 1 }
 0x5f1   :  { %1011 = vsyncpa [#allocation3 + $0x1], 1 }
 0x5f2   :  { %1012 = vsyncpa [#allocation6], 1 }
 0x5f3   :  { %1013 = vsyncpa [#allocation9], 1 }
 0x5f4   :  { %1014 = vsyncpa [#allocation4], 1 }
 0x5f5   :  { %1016 = vsyncpa [#allocation4 + $0x1], 1 }

</bundles_post_ra>
